<compile_context>
chip_gen: v5e
topology: v5e:2x2
jax: 0.10.0
libtpu: 0.0.40
codegen_flags: <defaults>
</compile_context>

<pallas_src>
import functools

import numpy as np
import jax
import jax.numpy as jnp
from jax.experimental import pallas as pl
from jax.experimental.pallas import tpu as pltpu

BN_EPS = 1e-5
C = 16        # per-tower conv channels (fused width = 2*C = 32)
HID = 32      # per-tower LSTM hidden size (fused width = 2*HID = 64)


# ----------------------------------------------------------------------------
# Trace-time constants: stacked tap-gather matrices and conv1 im2col
# ----------------------------------------------------------------------------
@functools.lru_cache(maxsize=None)
def _tap_gather(batch, hi, wi, stride):
    """Stacked 0/1 row-gather matrix for the non-empty taps of a 3x3 conv with
    padding=1 acting on channels-last activations flattened to
    (batch*hi*wi, Ctot) with row index b*hi*wi + i*wi + j.

    Returns (S_cat, taps, ho, wo) with S_cat of shape
    (len(taps) * batch*ho*wo, batch*hi*wi); block k of S_cat gathers the input
    rows seen by tap taps[k] at every output position (zero rows where the tap
    falls into padding).
    """
    # TODO(synk): S_cat couples batch on both axes (O(B^2) size / gather FLOPs);
    # switch to per-sample gather matrices before using large batch sizes.
    ho = (hi - 1) // stride + 1
    wo = (wi - 1) // stride + 1
    rows_out = batch * ho * wo
    rows_in = batch * hi * wi
    mats, taps = [], []
    for kh in range(3):
        for kw in range(3):
            m = np.zeros((rows_out, rows_in), np.float32)
            valid = False
            for b in range(batch):
                for oi in range(ho):
                    for oj in range(wo):
                        ii = oi * stride + kh - 1
                        jj = oj * stride + kw - 1
                        if 0 <= ii < hi and 0 <= jj < wi:
                            m[b * ho * wo + oi * wo + oj,
                              b * hi * wi + ii * wi + jj] = 1.0
                            valid = True
            if valid:
                mats.append(m)
                taps.append(kh * 3 + kw)
    return np.concatenate(mats, axis=0), tuple(taps), ho, wo


def _conv1_cols(inp):
    """(B, 1, H, W) -> im2col rows (B*Ho*Wo, 9) for 3x3 / stride-2 / pad-1."""
    b, _, h, w = inp.shape
    ho = (h - 1) // 2 + 1
    wo = (w - 1) // 2 + 1
    xp = jnp.pad(inp[:, 0], ((0, 0), (1, 1), (1, 1)))
    pats = [xp[:, kh:kh + 2 * ho:2, kw:kw + 2 * wo:2]
            for kh in range(3) for kw in range(3)]          # each (B, ho, wo)
    return jnp.stack(pats, axis=-1).reshape(b * ho * wo, 9), ho, wo


# ----------------------------------------------------------------------------
# Parameters: deterministic synthetic init (PyTorch layout), eval-mode BN and
# conv bias folded into the GEMM weights, then the two towers packed
# block-diagonally into the fused layout the kernel consumes.
# ----------------------------------------------------------------------------
def make_params(key, extra_dim, action_dim):
    counter = [0]

    def nrm(shape, s=0.1):
        counter[0] += 1
        return s * jax.random.normal(jax.random.fold_in(key, counter[0]),
                                     shape, jnp.float32)

    towers = []
    for tower in (1, 2):
        convs = []
        in_c = 1
        for layer in range(5):
            w = nrm((C, in_c, 3, 3))
            b = nrm((C,))
            has_bn = not (tower == 1 and layer == 4)     # conv5_1 has no BatchNorm
            if has_bn:
                gamma = 1.0 + nrm((C,))
                beta = nrm((C,))
                mean = nrm((C,))
                var = jnp.abs(nrm((C,))) + 0.5
                scale = gamma / jnp.sqrt(var + BN_EPS)
                shift = beta - mean * scale
            else:
                scale = jnp.ones((C,), jnp.float32)
                shift = jnp.zeros((C,), jnp.float32)
            # fold eval-mode BN + conv bias into the GEMM:
            #   relu((x@W + b)*scale + shift) == relu(x@(W*scale) + (b*scale+shift))
            wt = w.transpose(2, 3, 1, 0).reshape(9, in_c, C) * scale[None, None, :]
            bf = (b * scale + shift).reshape(1, C)
            convs.append((wt, bf))
            in_c = C

        towers.append(dict(
            convs=convs,
            w_ih=nrm((4 * HID, C)), w_hh=nrm((4 * HID, HID)),
            b_ih=nrm((4 * HID,)), b_hh=nrm((4 * HID,)),
            wlin1=nrm((64, HID + extra_dim + action_dim)), blin1=nrm((64,)),
            wlin2=nrm((128, 64)), blin2=nrm((128,)),
            wlin3=nrm((1, 128)), blin3=nrm((1,)),
        ))

    t0, t1 = towers
    C2, H2 = 2 * C, 2 * HID

    def cat_bias(a, b):
        return jnp.concatenate([a, b], axis=1)                      # (1, 2*C)

    def blockdiag_taps(a, b):                                       # -> (9,2C,2C)
        z = jnp.zeros((9, C2, C2), jnp.float32)
        return z.at[:, :C, :C].set(a).at[:, C:, C:].set(b)

    params = dict(
        # conv1: the single input channel is shared -> plain column concat
        w1=jnp.concatenate([t0["convs"][0][0].reshape(9, C),
                            t1["convs"][0][0].reshape(9, C)], axis=1),
        b1=cat_bias(t0["convs"][0][1], t1["convs"][0][1]),
    )
    for L in (2, 3, 4):
        params[f"w{L}"] = blockdiag_taps(t0["convs"][L - 1][0],
                                         t1["convs"][L - 1][0])
        params[f"b{L}"] = cat_bias(t0["convs"][L - 1][1], t1["convs"][L - 1][1])

    # conv5 acts on a 1x1 map (asserted in the wrapper) -> only the centre tap
    w5 = jnp.zeros((C2, C2), jnp.float32)
    params["w5"] = (w5.at[:C, :C].set(t0["convs"][4][0][4])
                      .at[C:, C:].set(t1["convs"][4][0][4]))
    params["b5"] = cat_bias(t0["convs"][4][1], t1["convs"][4][1])

    # LSTMCell (gate order i, f, g, o), both towers, 4 gates on the lane axis:
    #   gate j / tower t occupies columns [j*2H + t*H : j*2H + (t+1)*H]
    wih = jnp.zeros((C2, 4 * H2), jnp.float32)
    whh = jnp.zeros((H2, 4 * H2), jnp.float32)
    bl = jnp.zeros((4 * H2,), jnp.float32)
    for t, tw in enumerate((t0, t1)):
        for j in range(4):
            cs = j * H2 + t * HID
            wih = wih.at[t * C:(t + 1) * C, cs:cs + HID].set(
                tw["w_ih"][j * HID:(j + 1) * HID, :].T)
            whh = whh.at[t * HID:(t + 1) * HID, cs:cs + HID].set(
                tw["w_hh"][j * HID:(j + 1) * HID, :].T)
            bl = bl.at[cs:cs + HID].set(
                tw["b_ih"][j * HID:(j + 1) * HID]
                + tw["b_hh"][j * HID:(j + 1) * HID])
    params["wih"], params["whh"], params["blstm"] = wih, whh, bl.reshape(1, -1)

    # linear1 split: h-part (block-diag) + shared [extra, u]-part (column concat)
    wl1h = jnp.zeros((H2, 2 * 64), jnp.float32)
    params["wl1h"] = (wl1h.at[:HID, :64].set(t0["wlin1"][:, :HID].T)
                          .at[HID:, 64:].set(t1["wlin1"][:, :HID].T))
    params["wl1xu"] = jnp.concatenate(
        [t0["wlin1"][:, HID:].T, t1["wlin1"][:, HID:].T], axis=1)
    params["bl1"] = jnp.concatenate([t0["blin1"], t1["blin1"]]).reshape(1, -1)

    wl2 = jnp.zeros((2 * 64, 2 * 128), jnp.float32)
    params["wl2"] = (wl2.at[:64, :128].set(t0["wlin2"].T)
                         .at[64:, 128:].set(t1["wlin2"].T))
    params["bl2"] = jnp.concatenate([t0["blin2"], t1["blin2"]]).reshape(1, -1)

    wl3 = jnp.zeros((2 * 128, 2), jnp.float32)
    params["wl3"] = (wl3.at[:128, 0].set(t0["wlin3"][0])
                         .at[128:, 1].set(t1["wlin3"][0]))
    params["bl3"] = jnp.concatenate([t0["blin3"], t1["blin3"]]).reshape(1, -1)

    return params


# ----------------------------------------------------------------------------
# Critic forward (both Q heads) — one fused pallas_call, no grid
# ----------------------------------------------------------------------------
def critic_forward(params, inp, inp_extra, u, hx1, cx1, hx2, cx2):
    bsz = inp.shape[0]
    C2, H2 = 2 * C, 2 * HID

    cols1, ho1, wo1 = _conv1_cols(inp)                    # (B*8*8, 9)
    xu = jnp.concatenate([inp_extra, u], axis=1)          # (B, extra+action)
    hx = jnp.concatenate([hx1, hx2], axis=1)              # (B, 64) = [t1 | t2]
    cx = jnp.concatenate([cx1, cx2], axis=1)

    s2_np, taps2, ho2, wo2 = _tap_gather(bsz, ho1, wo1, 2)
    s3_np, taps3, ho3, wo3 = _tap_gather(bsz, ho2, wo2, 2)
    s4_np, taps4, ho4, wo4 = _tap_gather(bsz, ho3, wo3, 2)
    assert ho4 == 1 and wo4 == 1, "conv tower expects a 16x16 spatial input"
    s2, s3, s4 = jnp.asarray(s2_np), jnp.asarray(s3_np), jnp.asarray(s4_np)

    r2, n2 = bsz * ho2 * wo2, len(taps2)
    r3, n3 = bsz * ho3 * wo3, len(taps3)
    r4, n4 = bsz * ho4 * wo4, len(taps4)

    def pick_taps(w, taps):                 # keep only non-padding taps
        return w if len(taps) == 9 else w[jnp.asarray(taps)]

    w2 = pick_taps(params["w2"], taps2)
    w3 = pick_taps(params["w3"], taps3)
    w4 = pick_taps(params["w4"], taps4)

    def kernel(cols1_ref, xu_ref, hx_ref, cx_ref, s2_ref, s3_ref, s4_ref,
               w1_ref, b1_ref, w2_ref, b2_ref, w3_ref, b3_ref, w4_ref, b4_ref,
               w5_ref, b5_ref, wih_ref, whh_ref, blstm_ref,
               wl1h_ref, wl1xu_ref, bl1_ref, wl2_ref, bl2_ref, wl3_ref, bl3_ref,
               q_ref):
        f32 = jnp.float32

        def mm(a, b):
            return jnp.dot(a, b, preferred_element_type=f32)

        def conv_block(x, s_ref, w_ref, b_ref, rows_out, ntaps):
            # one fat gather GEMM (all taps at once), then per-tap weight GEMMs
            # accumulated in up-to-3 independent chains so MXU drains overlap.
            g = mm(s_ref[...], x)                        # (ntaps*rows_out, 2C)
            nchain = min(3, ntaps)
            partials = []
            for c0 in range(nchain):
                acc = None
                for k in range(c0, ntaps, nchain):
                    t = mm(g[k * rows_out:(k + 1) * rows_out, :], w_ref[k])
                    acc = t if acc is None else acc + t
                partials.append(acc)
            out = partials[0]
            for p in partials[1:]:
                out = out + p
            return jnp.maximum(out + b_ref[...], 0.0)

        # conv1 (+BN+ReLU): im2col rows precomputed outside (Cin == 1, shared)
        x = jnp.maximum(mm(cols1_ref[...], w1_ref[...]) + b1_ref[...], 0.0)
        # conv2..conv4 (+BN+ReLU), both towers block-diagonal in channels
        x = conv_block(x, s2_ref, w2_ref, b2_ref, r2, n2)   # (B*16, 32)
        x = conv_block(x, s3_ref, w3_ref, b3_ref, r3, n3)   # (B*4, 32)
        x = conv_block(x, s4_ref, w4_ref, b4_ref, r4, n4)   # (B, 32)
        # conv5 (+opt BN+ReLU): 1x1 map -> only the centre tap contributes
        x = jnp.maximum(mm(x, w5_ref[...]) + b5_ref[...], 0.0)   # (B, 32)
        # adaptive_avg_pool2d(., 1) over a 1x1 map is the identity.

        # LSTMCell, both towers at once: 2 GEMMs for all 4 gates (i, f, g, o)
        gates = (mm(x, wih_ref[...]) + mm(hx_ref[...], whh_ref[...])
                 + blstm_ref[...])                               # (B, 4*64)
        i_g = jax.nn.sigmoid(gates[:, 0 * H2:1 * H2])
        f_g = jax.nn.sigmoid(gates[:, 1 * H2:2 * H2])
        g_g = jnp.tanh(gates[:, 2 * H2:3 * H2])
        o_g = jax.nn.sigmoid(gates[:, 3 * H2:4 * H2])
        c_new = f_g * cx_ref[...] + i_g * g_g
        h_new = o_g * jnp.tanh(c_new)                            # (B, 64)

        # linear1(relu) on concat([h, extra, u]) as two GEMMs, then linear2/3;
        # all block-diagonal over the towers -> q columns are (q1, q2).
        y = jnp.maximum(mm(h_new, wl1h_ref[...]) + mm(xu_ref[...], wl1xu_ref[...])
                        + bl1_ref[...], 0.0)                     # (B, 128)
        y = jnp.maximum(mm(y, wl2_ref[...]) + bl2_ref[...], 0.0)  # (B, 256)
        q_ref[...] = mm(y, wl3_ref[...]) + bl3_ref[...]          # (B, 2)

    args = (cols1, xu, hx, cx, s2, s3, s4,
            params["w1"], params["b1"], w2, params["b2"], w3, params["b3"],
            w4, params["b4"], params["w5"], params["b5"],
            params["wih"], params["whh"], params["blstm"],
            params["wl1h"], params["wl1xu"], params["bl1"],
            params["wl2"], params["bl2"], params["wl3"], params["bl3"])

    # advisory cost estimate so XLA schedules this microsecond-scale call sensibly
    flops = 2 * cols1.shape[0] * cols1.shape[1] * C2
    for s, r, n in ((s2, r2, n2), (s3, r3, n3), (s4, r4, n4)):
        flops += 2 * s.shape[0] * s.shape[1] * C2 + n * 2 * r * C2 * C2
    flops += 2 * bsz * C2 * C2                                   # conv5
    flops += 2 * bsz * (C2 + H2) * 4 * H2                        # lstm gates
    flops += 2 * bsz * (H2 * 128 + xu.shape[1] * 128 + 128 * 256 + 256 * 2)
    bytes_accessed = 4 * (sum(int(np.prod(a.shape)) for a in args) + bsz * 2)

    q = pl.pallas_call(
        kernel,
        out_shape=jax.ShapeDtypeStruct((bsz, 2), jnp.float32),
        compiler_params=pltpu.CompilerParams(vmem_limit_bytes=16 * 1024 * 1024),
        cost_estimate=pl.CostEstimate(flops=int(flops),
                                      transcendentals=int(6 * bsz * H2),
                                      bytes_accessed=int(bytes_accessed)),
    )(*args)

    return q[:, 0:1], q[:, 1:2]


# ----------------------------------------------------------------------------
if __name__ == "__main__":
    B, H, W = 2, 16, 16
    EXTRA_DIM, ACTION_DIM = 4, 2          # 32 + 4 + 2 = 38 -> linear1

    key = jax.random.PRNGKey(0)
    kp, k1, k2, k3, k4, k5, k6, k7 = jax.random.split(key, 8)

    params = make_params(kp, EXTRA_DIM, ACTION_DIM)

    inp = jax.random.normal(k1, (B, 1, H, W), jnp.float32)       # NCHW
    inp_extra = jax.random.normal(k2, (B, EXTRA_DIM), jnp.float32)
    u = jax.random.normal(k3, (B, ACTION_DIM), jnp.float32)
    hx1 = jax.random.normal(k4, (B, HID), jnp.float32)
    cx1 = jax.random.normal(k5, (B, HID), jnp.float32)
    hx2 = jax.random.normal(k6, (B, HID), jnp.float32)
    cx2 = jax.random.normal(k7, (B, HID), jnp.float32)

    fwd = jax.jit(critic_forward)
    q1, q2 = fwd(params, inp, inp_extra, u, hx1, cx1, hx2, cx2)
    jax.block_until_ready((q1, q2))
    assert q1.shape == (B, 1) and q2.shape == (B, 1)
    print("KERNEL_OK")
</pallas_src>

<mosaic_0001>
module attributes {stable_mosaic.version = 11 : i64} {
  func.func @kernel(%arg0: memref<128x9xf32, #tpu.memory_space<vmem>>, %arg1: memref<2x6xf32, #tpu.memory_space<vmem>>, %arg2: memref<2x64xf32, #tpu.memory_space<vmem>>, %arg3: memref<2x64xf32, #tpu.memory_space<vmem>>, %arg4: memref<288x128xf32, #tpu.memory_space<vmem>>, %arg5: memref<72x32xf32, #tpu.memory_space<vmem>>, %arg6: memref<8x8xf32, #tpu.memory_space<vmem>>, %arg7: memref<9x32xf32, #tpu.memory_space<vmem>>, %arg8: memref<1x32xf32, #tpu.memory_space<vmem>>, %arg9: memref<9x32x32xf32, #tpu.memory_space<vmem>>, %arg10: memref<1x32xf32, #tpu.memory_space<vmem>>, %arg11: memref<9x32x32xf32, #tpu.memory_space<vmem>>, %arg12: memref<1x32xf32, #tpu.memory_space<vmem>>, %arg13: memref<4x32x32xf32, #tpu.memory_space<vmem>>, %arg14: memref<1x32xf32, #tpu.memory_space<vmem>>, %arg15: memref<32x32xf32, #tpu.memory_space<vmem>>, %arg16: memref<1x32xf32, #tpu.memory_space<vmem>>, %arg17: memref<32x256xf32, #tpu.memory_space<vmem>>, %arg18: memref<64x256xf32, #tpu.memory_space<vmem>>, %arg19: memref<1x256xf32, #tpu.memory_space<vmem>>, %arg20: memref<64x128xf32, #tpu.memory_space<vmem>>, %arg21: memref<6x128xf32, #tpu.memory_space<vmem>>, %arg22: memref<1x128xf32, #tpu.memory_space<vmem>>, %arg23: memref<128x256xf32, #tpu.memory_space<vmem>>, %arg24: memref<1x256xf32, #tpu.memory_space<vmem>>, %arg25: memref<256x2xf32, #tpu.memory_space<vmem>>, %arg26: memref<1x2xf32, #tpu.memory_space<vmem>>, %arg27: memref<2x2xf32, #tpu.memory_space<vmem>>) attributes {dimension_semantics = [], scalar_prefetch = 0 : i64, scratch_operands = 0 : i64, tpu.core_type = #tpu.core_type<tc>} {
    %c0 = arith.constant 0 : index
    %c0_0 = arith.constant 0 : index
    %0 = vector.load %arg0[%c0, %c0_0] : memref<128x9xf32, #tpu.memory_space<vmem>>, vector<128x9xf32>
    %c0_1 = arith.constant 0 : index
    %c0_2 = arith.constant 0 : index
    %1 = vector.load %arg7[%c0_1, %c0_2] : memref<9x32xf32, #tpu.memory_space<vmem>>, vector<9x32xf32>
    %cst = arith.constant dense<0.000000e+00> : vector<128x32xf32>
    %2 = tpu.matmul %0, %1, %cst {dimension_numbers = #tpu.dot_dimension_numbers<[1], [0], [0], [1], [0, 0, 1, 1], [], []>} : vector<128x9xf32>, vector<9x32xf32>, vector<128x32xf32> -> vector<128x32xf32>
    %c0_3 = arith.constant 0 : index
    %c0_4 = arith.constant 0 : index
    %3 = vector.load %arg8[%c0_3, %c0_4] : memref<1x32xf32, #tpu.memory_space<vmem>>, vector<1x32xf32>
    %4 = vector.broadcast %3 : vector<1x32xf32> to vector<128x32xf32>
    %5 = arith.addf %2, %4 : vector<128x32xf32>
    %cst_5 = arith.constant 0.000000e+00 : f32
    %6 = vector.broadcast %cst_5 : f32 to vector<128x32xf32>
    %7 = arith.maximumf %5, %6 : vector<128x32xf32>
    %c0_6 = arith.constant 0 : index
    %c0_7 = arith.constant 0 : index
    %8 = vector.load %arg4[%c0_6, %c0_7] : memref<288x128xf32, #tpu.memory_space<vmem>>, vector<288x128xf32>
    %cst_8 = arith.constant dense<0.000000e+00> : vector<288x32xf32>
    %9 = tpu.matmul %8, %7, %cst_8 {dimension_numbers = #tpu.dot_dimension_numbers<[1], [0], [0], [1], [0, 0, 1, 1], [], []>} : vector<288x128xf32>, vector<128x32xf32>, vector<288x32xf32> -> vector<288x32xf32>
    %10 = vector.extract_strided_slice %9 {offsets = [0, 0], sizes = [32, 32], strides = [1, 1]} : vector<288x32xf32> to vector<32x32xf32>
    %c0_9 = arith.constant 0 : index
    %c0_10 = arith.constant 0 : index
    %c0_11 = arith.constant 0 : index
    %11 = vector.load %arg9[%c0_9, %c0_10, %c0_11] : memref<9x32x32xf32, #tpu.memory_space<vmem>>, vector<1x32x32xf32>
    %12 = vector.shape_cast %11 : vector<1x32x32xf32> to vector<32x32xf32>
    %cst_12 = arith.constant dense<0.000000e+00> : vector<32x32xf32>
    %13 = tpu.matmul %10, %12, %cst_12 {dimension_numbers = #tpu.dot_dimension_numbers<[1], [0], [0], [1], [0, 0, 1, 1], [], []>} : vector<32x32xf32>, vector<32x32xf32>, vector<32x32xf32> -> vector<32x32xf32>
    %14 = vector.extract_strided_slice %9 {offsets = [96, 0], sizes = [32, 32], strides = [1, 1]} : vector<288x32xf32> to vector<32x32xf32>
    %c3 = arith.constant 3 : index
    %c0_13 = arith.constant 0 : index
    %c0_14 = arith.constant 0 : index
    %15 = vector.load %arg9[%c3, %c0_13, %c0_14] : memref<9x32x32xf32, #tpu.memory_space<vmem>>, vector<1x32x32xf32>
    %16 = vector.shape_cast %15 : vector<1x32x32xf32> to vector<32x32xf32>
    %cst_15 = arith.constant dense<0.000000e+00> : vector<32x32xf32>
    %17 = tpu.matmul %14, %16, %cst_15 {dimension_numbers = #tpu.dot_dimension_numbers<[1], [0], [0], [1], [0, 0, 1, 1], [], []>} : vector<32x32xf32>, vector<32x32xf32>, vector<32x32xf32> -> vector<32x32xf32>
    %18 = arith.addf %13, %17 : vector<32x32xf32>
    %19 = vector.extract_strided_slice %9 {offsets = [192, 0], sizes = [32, 32], strides = [1, 1]} : vector<288x32xf32> to vector<32x32xf32>
    %c6 = arith.constant 6 : index
    %c0_16 = arith.constant 0 : index
    %c0_17 = arith.constant 0 : index
    %20 = vector.load %arg9[%c6, %c0_16, %c0_17] : memref<9x32x32xf32, #tpu.memory_space<vmem>>, vector<1x32x32xf32>
    %21 = vector.shape_cast %20 : vector<1x32x32xf32> to vector<32x32xf32>
    %cst_18 = arith.constant dense<0.000000e+00> : vector<32x32xf32>
    %22 = tpu.matmul %19, %21, %cst_18 {dimension_numbers = #tpu.dot_dimension_numbers<[1], [0], [0], [1], [0, 0, 1, 1], [], []>} : vector<32x32xf32>, vector<32x32xf32>, vector<32x32xf32> -> vector<32x32xf32>
    %23 = arith.addf %18, %22 : vector<32x32xf32>
    %24 = vector.extract_strided_slice %9 {offsets = [32, 0], sizes = [32, 32], strides = [1, 1]} : vector<288x32xf32> to vector<32x32xf32>
    %c1 = arith.constant 1 : index
    %c0_19 = arith.constant 0 : index
    %c0_20 = arith.constant 0 : index
    %25 = vector.load %arg9[%c1, %c0_19, %c0_20] : memref<9x32x32xf32, #tpu.memory_space<vmem>>, vector<1x32x32xf32>
    %26 = vector.shape_cast %25 : vector<1x32x32xf32> to vector<32x32xf32>
    %cst_21 = arith.constant dense<0.000000e+00> : vector<32x32xf32>
    %27 = tpu.matmul %24, %26, %cst_21 {dimension_numbers = #tpu.dot_dimension_numbers<[1], [0], [0], [1], [0, 0, 1, 1], [], []>} : vector<32x32xf32>, vector<32x32xf32>, vector<32x32xf32> -> vector<32x32xf32>
    %28 = vector.extract_strided_slice %9 {offsets = [128, 0], sizes = [32, 32], strides = [1, 1]} : vector<288x32xf32> to vector<32x32xf32>
    %c4 = arith.constant 4 : index
    %c0_22 = arith.constant 0 : index
    %c0_23 = arith.constant 0 : index
    %29 = vector.load %arg9[%c4, %c0_22, %c0_23] : memref<9x32x32xf32, #tpu.memory_space<vmem>>, vector<1x32x32xf32>
    %30 = vector.shape_cast %29 : vector<1x32x32xf32> to vector<32x32xf32>
    %cst_24 = arith.constant dense<0.000000e+00> : vector<32x32xf32>
    %31 = tpu.matmul %28, %30, %cst_24 {dimension_numbers = #tpu.dot_dimension_numbers<[1], [0], [0], [1], [0, 0, 1, 1], [], []>} : vector<32x32xf32>, vector<32x32xf32>, vector<32x32xf32> -> vector<32x32xf32>
    %32 = arith.addf %27, %31 : vector<32x32xf32>
    %33 = vector.extract_strided_slice %9 {offsets = [224, 0], sizes = [32, 32], strides = [1, 1]} : vector<288x32xf32> to vector<32x32xf32>
    %c7 = arith.constant 7 : index
    %c0_25 = arith.constant 0 : index
    %c0_26 = arith.constant 0 : index
    %34 = vector.load %arg9[%c7, %c0_25, %c0_26] : memref<9x32x32xf32, #tpu.memory_space<vmem>>, vector<1x32x32xf32>
    %35 = vector.shape_cast %34 : vector<1x32x32xf32> to vector<32x32xf32>
    %cst_27 = arith.constant dense<0.000000e+00> : vector<32x32xf32>
    %36 = tpu.matmul %33, %35, %cst_27 {dimension_numbers = #tpu.dot_dimension_numbers<[1], [0], [0], [1], [0, 0, 1, 1], [], []>} : vector<32x32xf32>, vector<32x32xf32>, vector<32x32xf32> -> vector<32x32xf32>
    %37 = arith.addf %32, %36 : vector<32x32xf32>
    %38 = vector.extract_strided_slice %9 {offsets = [64, 0], sizes = [32, 32], strides = [1, 1]} : vector<288x32xf32> to vector<32x32xf32>
    %c2 = arith.constant 2 : index
    %c0_28 = arith.constant 0 : index
    %c0_29 = arith.constant 0 : index
    %39 = vector.load %arg9[%c2, %c0_28, %c0_29] : memref<9x32x32xf32, #tpu.memory_space<vmem>>, vector<1x32x32xf32>
    %40 = vector.shape_cast %39 : vector<1x32x32xf32> to vector<32x32xf32>
    %cst_30 = arith.constant dense<0.000000e+00> : vector<32x32xf32>
    %41 = tpu.matmul %38, %40, %cst_30 {dimension_numbers = #tpu.dot_dimension_numbers<[1], [0], [0], [1], [0, 0, 1, 1], [], []>} : vector<32x32xf32>, vector<32x32xf32>, vector<32x32xf32> -> vector<32x32xf32>
    %42 = vector.extract_strided_slice %9 {offsets = [160, 0], sizes = [32, 32], strides = [1, 1]} : vector<288x32xf32> to vector<32x32xf32>
    %c5 = arith.constant 5 : index
    %c0_31 = arith.constant 0 : index
    %c0_32 = arith.constant 0 : index
    %43 = vector.load %arg9[%c5, %c0_31, %c0_32] : memref<9x32x32xf32, #tpu.memory_space<vmem>>, vector<1x32x32xf32>
    %44 = vector.shape_cast %43 : vector<1x32x32xf32> to vector<32x32xf32>
    %cst_33 = arith.constant dense<0.000000e+00> : vector<32x32xf32>
    %45 = tpu.matmul %42, %44, %cst_33 {dimension_numbers = #tpu.dot_dimension_numbers<[1], [0], [0], [1], [0, 0, 1, 1], [], []>} : vector<32x32xf32>, vector<32x32xf32>, vector<32x32xf32> -> vector<32x32xf32>
    %46 = arith.addf %41, %45 : vector<32x32xf32>
    %47 = vector.extract_strided_slice %9 {offsets = [256, 0], sizes = [32, 32], strides = [1, 1]} : vector<288x32xf32> to vector<32x32xf32>
    %c8 = arith.constant 8 : index
    %c0_34 = arith.constant 0 : index
    %c0_35 = arith.constant 0 : index
    %48 = vector.load %arg9[%c8, %c0_34, %c0_35] : memref<9x32x32xf32, #tpu.memory_space<vmem>>, vector<1x32x32xf32>
    %49 = vector.shape_cast %48 : vector<1x32x32xf32> to vector<32x32xf32>
    %cst_36 = arith.constant dense<0.000000e+00> : vector<32x32xf32>
    %50 = tpu.matmul %47, %49, %cst_36 {dimension_numbers = #tpu.dot_dimension_numbers<[1], [0], [0], [1], [0, 0, 1, 1], [], []>} : vector<32x32xf32>, vector<32x32xf32>, vector<32x32xf32> -> vector<32x32xf32>
    %51 = arith.addf %46, %50 : vector<32x32xf32>
    %52 = arith.addf %23, %37 : vector<32x32xf32>
    %53 = arith.addf %52, %51 : vector<32x32xf32>
    %c0_37 = arith.constant 0 : index
    %c0_38 = arith.constant 0 : index
    %54 = vector.load %arg10[%c0_37, %c0_38] : memref<1x32xf32, #tpu.memory_space<vmem>>, vector<1x32xf32>
    %55 = vector.broadcast %54 : vector<1x32xf32> to vector<32x32xf32>
    %56 = arith.addf %53, %55 : vector<32x32xf32>
    %cst_39 = arith.constant 0.000000e+00 : f32
    %57 = vector.broadcast %cst_39 : f32 to vector<32x32xf32>
    %58 = arith.maximumf %56, %57 : vector<32x32xf32>
    %c0_40 = arith.constant 0 : index
    %c0_41 = arith.constant 0 : index
    %59 = vector.load %arg5[%c0_40, %c0_41] : memref<72x32xf32, #tpu.memory_space<vmem>>, vector<72x32xf32>
    %cst_42 = arith.constant dense<0.000000e+00> : vector<72x32xf32>
    %60 = tpu.matmul %59, %58, %cst_42 {dimension_numbers = #tpu.dot_dimension_numbers<[1], [0], [0], [1], [0, 0, 1, 1], [], []>} : vector<72x32xf32>, vector<32x32xf32>, vector<72x32xf32> -> vector<72x32xf32>
    %61 = vector.extract_strided_slice %60 {offsets = [0, 0], sizes = [8, 32], strides = [1, 1]} : vector<72x32xf32> to vector<8x32xf32>
    %c0_43 = arith.constant 0 : index
    %c0_44 = arith.constant 0 : index
    %c0_45 = arith.constant 0 : index
    %62 = vector.load %arg11[%c0_43, %c0_44, %c0_45] : memref<9x32x32xf32, #tpu.memory_space<vmem>>, vector<1x32x32xf32>
    %63 = vector.shape_cast %62 : vector<1x32x32xf32> to vector<32x32xf32>
    %cst_46 = arith.constant dense<0.000000e+00> : vector<8x32xf32>
    %64 = tpu.matmul %61, %63, %cst_46 {dimension_numbers = #tpu.dot_dimension_numbers<[1], [0], [0], [1], [0, 0, 1, 1], [], []>} : vector<8x32xf32>, vector<32x32xf32>, vector<8x32xf32> -> vector<8x32xf32>
    %65 = vector.extract_strided_slice %60 {offsets = [24, 0], sizes = [8, 32], strides = [1, 1]} : vector<72x32xf32> to vector<8x32xf32>
    %c3_47 = arith.constant 3 : index
    %c0_48 = arith.constant 0 : index
    %c0_49 = arith.constant 0 : index
    %66 = vector.load %arg11[%c3_47, %c0_48, %c0_49] : memref<9x32x32xf32, #tpu.memory_space<vmem>>, vector<1x32x32xf32>
    %67 = vector.shape_cast %66 : vector<1x32x32xf32> to vector<32x32xf32>
    %cst_50 = arith.constant dense<0.000000e+00> : vector<8x32xf32>
    %68 = tpu.matmul %65, %67, %cst_50 {dimension_numbers = #tpu.dot_dimension_numbers<[1], [0], [0], [1], [0, 0, 1, 1], [], []>} : vector<8x32xf32>, vector<32x32xf32>, vector<8x32xf32> -> vector<8x32xf32>
    %69 = arith.addf %64, %68 : vector<8x32xf32>
    %70 = vector.extract_strided_slice %60 {offsets = [48, 0], sizes = [8, 32], strides = [1, 1]} : vector<72x32xf32> to vector<8x32xf32>
    %c6_51 = arith.constant 6 : index
    %c0_52 = arith.constant 0 : index
    %c0_53 = arith.constant 0 : index
    %71 = vector.load %arg11[%c6_51, %c0_52, %c0_53] : memref<9x32x32xf32, #tpu.memory_space<vmem>>, vector<1x32x32xf32>
    %72 = vector.shape_cast %71 : vector<1x32x32xf32> to vector<32x32xf32>
    %cst_54 = arith.constant dense<0.000000e+00> : vector<8x32xf32>
    %73 = tpu.matmul %70, %72, %cst_54 {dimension_numbers = #tpu.dot_dimension_numbers<[1], [0], [0], [1], [0, 0, 1, 1], [], []>} : vector<8x32xf32>, vector<32x32xf32>, vector<8x32xf32> -> vector<8x32xf32>
    %74 = arith.addf %69, %73 : vector<8x32xf32>
    %75 = vector.extract_strided_slice %60 {offsets = [8, 0], sizes = [8, 32], strides = [1, 1]} : vector<72x32xf32> to vector<8x32xf32>
    %c1_55 = arith.constant 1 : index
    %c0_56 = arith.constant 0 : index
    %c0_57 = arith.constant 0 : index
    %76 = vector.load %arg11[%c1_55, %c0_56, %c0_57] : memref<9x32x32xf32, #tpu.memory_space<vmem>>, vector<1x32x32xf32>
    %77 = vector.shape_cast %76 : vector<1x32x32xf32> to vector<32x32xf32>
    %cst_58 = arith.constant dense<0.000000e+00> : vector<8x32xf32>
    %78 = tpu.matmul %75, %77, %cst_58 {dimension_numbers = #tpu.dot_dimension_numbers<[1], [0], [0], [1], [0, 0, 1, 1], [], []>} : vector<8x32xf32>, vector<32x32xf32>, vector<8x32xf32> -> vector<8x32xf32>
    %79 = vector.extract_strided_slice %60 {offsets = [32, 0], sizes = [8, 32], strides = [1, 1]} : vector<72x32xf32> to vector<8x32xf32>
    %c4_59 = arith.constant 4 : index
    %c0_60 = arith.constant 0 : index
    %c0_61 = arith.constant 0 : index
    %80 = vector.load %arg11[%c4_59, %c0_60, %c0_61] : memref<9x32x32xf32, #tpu.memory_space<vmem>>, vector<1x32x32xf32>
    %81 = vector.shape_cast %80 : vector<1x32x32xf32> to vector<32x32xf32>
    %cst_62 = arith.constant dense<0.000000e+00> : vector<8x32xf32>
    %82 = tpu.matmul %79, %81, %cst_62 {dimension_numbers = #tpu.dot_dimension_numbers<[1], [0], [0], [1], [0, 0, 1, 1], [], []>} : vector<8x32xf32>, vector<32x32xf32>, vector<8x32xf32> -> vector<8x32xf32>
    %83 = arith.addf %78, %82 : vector<8x32xf32>
    %84 = vector.extract_strided_slice %60 {offsets = [56, 0], sizes = [8, 32], strides = [1, 1]} : vector<72x32xf32> to vector<8x32xf32>
    %c7_63 = arith.constant 7 : index
    %c0_64 = arith.constant 0 : index
    %c0_65 = arith.constant 0 : index
    %85 = vector.load %arg11[%c7_63, %c0_64, %c0_65] : memref<9x32x32xf32, #tpu.memory_space<vmem>>, vector<1x32x32xf32>
    %86 = vector.shape_cast %85 : vector<1x32x32xf32> to vector<32x32xf32>
    %cst_66 = arith.constant dense<0.000000e+00> : vector<8x32xf32>
    %87 = tpu.matmul %84, %86, %cst_66 {dimension_numbers = #tpu.dot_dimension_numbers<[1], [0], [0], [1], [0, 0, 1, 1], [], []>} : vector<8x32xf32>, vector<32x32xf32>, vector<8x32xf32> -> vector<8x32xf32>
    %88 = arith.addf %83, %87 : vector<8x32xf32>
    %89 = vector.extract_strided_slice %60 {offsets = [16, 0], sizes = [8, 32], strides = [1, 1]} : vector<72x32xf32> to vector<8x32xf32>
    %c2_67 = arith.constant 2 : index
    %c0_68 = arith.constant 0 : index
    %c0_69 = arith.constant 0 : index
    %90 = vector.load %arg11[%c2_67, %c0_68, %c0_69] : memref<9x32x32xf32, #tpu.memory_space<vmem>>, vector<1x32x32xf32>
    %91 = vector.shape_cast %90 : vector<1x32x32xf32> to vector<32x32xf32>
    %cst_70 = arith.constant dense<0.000000e+00> : vector<8x32xf32>
    %92 = tpu.matmul %89, %91, %cst_70 {dimension_numbers = #tpu.dot_dimension_numbers<[1], [0], [0], [1], [0, 0, 1, 1], [], []>} : vector<8x32xf32>, vector<32x32xf32>, vector<8x32xf32> -> vector<8x32xf32>
    %93 = vector.extract_strided_slice %60 {offsets = [40, 0], sizes = [8, 32], strides = [1, 1]} : vector<72x32xf32> to vector<8x32xf32>
    %c5_71 = arith.constant 5 : index
    %c0_72 = arith.constant 0 : index
    %c0_73 = arith.constant 0 : index
    %94 = vector.load %arg11[%c5_71, %c0_72, %c0_73] : memref<9x32x32xf32, #tpu.memory_space<vmem>>, vector<1x32x32xf32>
    %95 = vector.shape_cast %94 : vector<1x32x32xf32> to vector<32x32xf32>
    %cst_74 = arith.constant dense<0.000000e+00> : vector<8x32xf32>
    %96 = tpu.matmul %93, %95, %cst_74 {dimension_numbers = #tpu.dot_dimension_numbers<[1], [0], [0], [1], [0, 0, 1, 1], [], []>} : vector<8x32xf32>, vector<32x32xf32>, vector<8x32xf32> -> vector<8x32xf32>
    %97 = arith.addf %92, %96 : vector<8x32xf32>
    %98 = vector.extract_strided_slice %60 {offsets = [64, 0], sizes = [8, 32], strides = [1, 1]} : vector<72x32xf32> to vector<8x32xf32>
    %c8_75 = arith.constant 8 : index
    %c0_76 = arith.constant 0 : index
    %c0_77 = arith.constant 0 : index
    %99 = vector.load %arg11[%c8_75, %c0_76, %c0_77] : memref<9x32x32xf32, #tpu.memory_space<vmem>>, vector<1x32x32xf32>
    %100 = vector.shape_cast %99 : vector<1x32x32xf32> to vector<32x32xf32>
    %cst_78 = arith.constant dense<0.000000e+00> : vector<8x32xf32>
    %101 = tpu.matmul %98, %100, %cst_78 {dimension_numbers = #tpu.dot_dimension_numbers<[1], [0], [0], [1], [0, 0, 1, 1], [], []>} : vector<8x32xf32>, vector<32x32xf32>, vector<8x32xf32> -> vector<8x32xf32>
    %102 = arith.addf %97, %101 : vector<8x32xf32>
    %103 = arith.addf %74, %88 : vector<8x32xf32>
    %104 = arith.addf %103, %102 : vector<8x32xf32>
    %c0_79 = arith.constant 0 : index
    %c0_80 = arith.constant 0 : index
    %105 = vector.load %arg12[%c0_79, %c0_80] : memref<1x32xf32, #tpu.memory_space<vmem>>, vector<1x32xf32>
    %106 = vector.broadcast %105 : vector<1x32xf32> to vector<8x32xf32>
    %107 = arith.addf %104, %106 : vector<8x32xf32>
    %cst_81 = arith.constant 0.000000e+00 : f32
    %108 = vector.broadcast %cst_81 : f32 to vector<8x32xf32>
    %109 = arith.maximumf %107, %108 : vector<8x32xf32>
    %c0_82 = arith.constant 0 : index
    %c0_83 = arith.constant 0 : index
    %110 = vector.load %arg6[%c0_82, %c0_83] : memref<8x8xf32, #tpu.memory_space<vmem>>, vector<8x8xf32>
    %cst_84 = arith.constant dense<0.000000e+00> : vector<8x32xf32>
    %111 = tpu.matmul %110, %109, %cst_84 {dimension_numbers = #tpu.dot_dimension_numbers<[1], [0], [0], [1], [0, 0, 1, 1], [], []>} : vector<8x8xf32>, vector<8x32xf32>, vector<8x32xf32> -> vector<8x32xf32>
    %112 = vector.extract_strided_slice %111 {offsets = [0, 0], sizes = [2, 32], strides = [1, 1]} : vector<8x32xf32> to vector<2x32xf32>
    %c0_85 = arith.constant 0 : index
    %c0_86 = arith.constant 0 : index
    %c0_87 = arith.constant 0 : index
    %113 = vector.load %arg13[%c0_85, %c0_86, %c0_87] : memref<4x32x32xf32, #tpu.memory_space<vmem>>, vector<1x32x32xf32>
    %114 = vector.shape_cast %113 : vector<1x32x32xf32> to vector<32x32xf32>
    %cst_88 = arith.constant dense<0.000000e+00> : vector<2x32xf32>
    %115 = tpu.matmul %112, %114, %cst_88 {dimension_numbers = #tpu.dot_dimension_numbers<[1], [0], [0], [1], [0, 0, 1, 1], [], []>} : vector<2x32xf32>, vector<32x32xf32>, vector<2x32xf32> -> vector<2x32xf32>
    %116 = vector.extract_strided_slice %111 {offsets = [6, 0], sizes = [2, 32], strides = [1, 1]} : vector<8x32xf32> to vector<2x32xf32>
    %c3_89 = arith.constant 3 : index
    %c0_90 = arith.constant 0 : index
    %c0_91 = arith.constant 0 : index
    %117 = vector.load %arg13[%c3_89, %c0_90, %c0_91] : memref<4x32x32xf32, #tpu.memory_space<vmem>>, vector<1x32x32xf32>
    %118 = vector.shape_cast %117 : vector<1x32x32xf32> to vector<32x32xf32>
    %cst_92 = arith.constant dense<0.000000e+00> : vector<2x32xf32>
    %119 = tpu.matmul %116, %118, %cst_92 {dimension_numbers = #tpu.dot_dimension_numbers<[1], [0], [0], [1], [0, 0, 1, 1], [], []>} : vector<2x32xf32>, vector<32x32xf32>, vector<2x32xf32> -> vector<2x32xf32>
    %120 = arith.addf %115, %119 : vector<2x32xf32>
    %121 = vector.extract_strided_slice %111 {offsets = [2, 0], sizes = [2, 32], strides = [1, 1]} : vector<8x32xf32> to vector<2x32xf32>
    %c1_93 = arith.constant 1 : index
    %c0_94 = arith.constant 0 : index
    %c0_95 = arith.constant 0 : index
    %122 = vector.load %arg13[%c1_93, %c0_94, %c0_95] : memref<4x32x32xf32, #tpu.memory_space<vmem>>, vector<1x32x32xf32>
    %123 = vector.shape_cast %122 : vector<1x32x32xf32> to vector<32x32xf32>
    %cst_96 = arith.constant dense<0.000000e+00> : vector<2x32xf32>
    %124 = tpu.matmul %121, %123, %cst_96 {dimension_numbers = #tpu.dot_dimension_numbers<[1], [0], [0], [1], [0, 0, 1, 1], [], []>} : vector<2x32xf32>, vector<32x32xf32>, vector<2x32xf32> -> vector<2x32xf32>
    %125 = vector.extract_strided_slice %111 {offsets = [4, 0], sizes = [2, 32], strides = [1, 1]} : vector<8x32xf32> to vector<2x32xf32>
    %c2_97 = arith.constant 2 : index
    %c0_98 = arith.constant 0 : index
    %c0_99 = arith.constant 0 : index
    %126 = vector.load %arg13[%c2_97, %c0_98, %c0_99] : memref<4x32x32xf32, #tpu.memory_space<vmem>>, vector<1x32x32xf32>
    %127 = vector.shape_cast %126 : vector<1x32x32xf32> to vector<32x32xf32>
    %cst_100 = arith.constant dense<0.000000e+00> : vector<2x32xf32>
    %128 = tpu.matmul %125, %127, %cst_100 {dimension_numbers = #tpu.dot_dimension_numbers<[1], [0], [0], [1], [0, 0, 1, 1], [], []>} : vector<2x32xf32>, vector<32x32xf32>, vector<2x32xf32> -> vector<2x32xf32>
    %129 = arith.addf %120, %124 : vector<2x32xf32>
    %130 = arith.addf %129, %128 : vector<2x32xf32>
    %c0_101 = arith.constant 0 : index
    %c0_102 = arith.constant 0 : index
    %131 = vector.load %arg14[%c0_101, %c0_102] : memref<1x32xf32, #tpu.memory_space<vmem>>, vector<1x32xf32>
    %132 = vector.broadcast %131 : vector<1x32xf32> to vector<2x32xf32>
    %133 = arith.addf %130, %132 : vector<2x32xf32>
    %cst_103 = arith.constant 0.000000e+00 : f32
    %134 = vector.broadcast %cst_103 : f32 to vector<2x32xf32>
    %135 = arith.maximumf %133, %134 : vector<2x32xf32>
    %c0_104 = arith.constant 0 : index
    %c0_105 = arith.constant 0 : index
    %136 = vector.load %arg15[%c0_104, %c0_105] : memref<32x32xf32, #tpu.memory_space<vmem>>, vector<32x32xf32>
    %cst_106 = arith.constant dense<0.000000e+00> : vector<2x32xf32>
    %137 = tpu.matmul %135, %136, %cst_106 {dimension_numbers = #tpu.dot_dimension_numbers<[1], [0], [0], [1], [0, 0, 1, 1], [], []>} : vector<2x32xf32>, vector<32x32xf32>, vector<2x32xf32> -> vector<2x32xf32>
    %c0_107 = arith.constant 0 : index
    %c0_108 = arith.constant 0 : index
    %138 = vector.load %arg16[%c0_107, %c0_108] : memref<1x32xf32, #tpu.memory_space<vmem>>, vector<1x32xf32>
    %139 = vector.broadcast %138 : vector<1x32xf32> to vector<2x32xf32>
    %140 = arith.addf %137, %139 : vector<2x32xf32>
    %cst_109 = arith.constant 0.000000e+00 : f32
    %141 = vector.broadcast %cst_109 : f32 to vector<2x32xf32>
    %142 = arith.maximumf %140, %141 : vector<2x32xf32>
    %c0_110 = arith.constant 0 : index
    %c0_111 = arith.constant 0 : index
    %143 = vector.load %arg17[%c0_110, %c0_111] : memref<32x256xf32, #tpu.memory_space<vmem>>, vector<32x256xf32>
    %cst_112 = arith.constant dense<0.000000e+00> : vector<2x256xf32>
    %144 = tpu.matmul %142, %143, %cst_112 {dimension_numbers = #tpu.dot_dimension_numbers<[1], [0], [0], [1], [0, 0, 1, 1], [], []>} : vector<2x32xf32>, vector<32x256xf32>, vector<2x256xf32> -> vector<2x256xf32>
    %c0_113 = arith.constant 0 : index
    %c0_114 = arith.constant 0 : index
    %145 = vector.load %arg2[%c0_113, %c0_114] : memref<2x64xf32, #tpu.memory_space<vmem>>, vector<2x64xf32>
    %c0_115 = arith.constant 0 : index
    %c0_116 = arith.constant 0 : index
    %146 = vector.load %arg18[%c0_115, %c0_116] : memref<64x256xf32, #tpu.memory_space<vmem>>, vector<64x256xf32>
    %cst_117 = arith.constant dense<0.000000e+00> : vector<2x256xf32>
    %147 = tpu.matmul %145, %146, %cst_117 {dimension_numbers = #tpu.dot_dimension_numbers<[1], [0], [0], [1], [0, 0, 1, 1], [], []>} : vector<2x64xf32>, vector<64x256xf32>, vector<2x256xf32> -> vector<2x256xf32>
    %148 = arith.addf %144, %147 : vector<2x256xf32>
    %c0_118 = arith.constant 0 : index
    %c0_119 = arith.constant 0 : index
    %149 = vector.load %arg19[%c0_118, %c0_119] : memref<1x256xf32, #tpu.memory_space<vmem>>, vector<1x256xf32>
    %150 = vector.broadcast %149 : vector<1x256xf32> to vector<2x256xf32>
    %151 = arith.addf %148, %150 : vector<2x256xf32>
    %152 = vector.extract_strided_slice %151 {offsets = [0, 0], sizes = [2, 64], strides = [1, 1]} : vector<2x256xf32> to vector<2x64xf32>
    %153 = arith.negf %152 : vector<2x64xf32>
    %154 = math.exp %153 : vector<2x64xf32>
    %cst_120 = arith.constant 1.000000e+00 : f32
    %155 = vector.broadcast %cst_120 : f32 to vector<2x64xf32>
    %156 = arith.addf %155, %154 : vector<2x64xf32>
    %157 = arith.divf %155, %156 : vector<2x64xf32>
    %158 = vector.extract_strided_slice %151 {offsets = [0, 64], sizes = [2, 64], strides = [1, 1]} : vector<2x256xf32> to vector<2x64xf32>
    %159 = arith.negf %158 : vector<2x64xf32>
    %160 = math.exp %159 : vector<2x64xf32>
    %cst_121 = arith.constant 1.000000e+00 : f32
    %161 = vector.broadcast %cst_121 : f32 to vector<2x64xf32>
    %162 = arith.addf %161, %160 : vector<2x64xf32>
    %163 = arith.divf %161, %162 : vector<2x64xf32>
    %164 = vector.extract_strided_slice %151 {offsets = [0, 128], sizes = [2, 64], strides = [1, 1]} : vector<2x256xf32> to vector<2x64xf32>
    %165 = math.tanh %164 : vector<2x64xf32>
    %166 = vector.extract_strided_slice %151 {offsets = [0, 192], sizes = [2, 64], strides = [1, 1]} : vector<2x256xf32> to vector<2x64xf32>
    %167 = arith.negf %166 : vector<2x64xf32>
    %168 = math.exp %167 : vector<2x64xf32>
    %cst_122 = arith.constant 1.000000e+00 : f32
    %169 = vector.broadcast %cst_122 : f32 to vector<2x64xf32>
    %170 = arith.addf %169, %168 : vector<2x64xf32>
    %171 = arith.divf %169, %170 : vector<2x64xf32>
    %c0_123 = arith.constant 0 : index
    %c0_124 = arith.constant 0 : index
    %172 = vector.load %arg3[%c0_123, %c0_124] : memref<2x64xf32, #tpu.memory_space<vmem>>, vector<2x64xf32>
    %173 = arith.mulf %163, %172 : vector<2x64xf32>
    %174 = arith.mulf %157, %165 : vector<2x64xf32>
    %175 = arith.addf %173, %174 : vector<2x64xf32>
    %176 = math.tanh %175 : vector<2x64xf32>
    %177 = arith.mulf %171, %176 : vector<2x64xf32>
    %c0_125 = arith.constant 0 : index
    %c0_126 = arith.constant 0 : index
    %178 = vector.load %arg20[%c0_125, %c0_126] : memref<64x128xf32, #tpu.memory_space<vmem>>, vector<64x128xf32>
    %cst_127 = arith.constant dense<0.000000e+00> : vector<2x128xf32>
    %179 = tpu.matmul %177, %178, %cst_127 {dimension_numbers = #tpu.dot_dimension_numbers<[1], [0], [0], [1], [0, 0, 1, 1], [], []>} : vector<2x64xf32>, vector<64x128xf32>, vector<2x128xf32> -> vector<2x128xf32>
    %c0_128 = arith.constant 0 : index
    %c0_129 = arith.constant 0 : index
    %180 = vector.load %arg1[%c0_128, %c0_129] : memref<2x6xf32, #tpu.memory_space<vmem>>, vector<2x6xf32>
    %c0_130 = arith.constant 0 : index
    %c0_131 = arith.constant 0 : index
    %181 = vector.load %arg21[%c0_130, %c0_131] : memref<6x128xf32, #tpu.memory_space<vmem>>, vector<6x128xf32>
    %cst_132 = arith.constant dense<0.000000e+00> : vector<2x128xf32>
    %182 = tpu.matmul %180, %181, %cst_132 {dimension_numbers = #tpu.dot_dimension_numbers<[1], [0], [0], [1], [0, 0, 1, 1], [], []>} : vector<2x6xf32>, vector<6x128xf32>, vector<2x128xf32> -> vector<2x128xf32>
    %183 = arith.addf %179, %182 : vector<2x128xf32>
    %c0_133 = arith.constant 0 : index
    %c0_134 = arith.constant 0 : index
    %184 = vector.load %arg22[%c0_133, %c0_134] : memref<1x128xf32, #tpu.memory_space<vmem>>, vector<1x128xf32>
    %185 = vector.broadcast %184 : vector<1x128xf32> to vector<2x128xf32>
    %186 = arith.addf %183, %185 : vector<2x128xf32>
    %cst_135 = arith.constant 0.000000e+00 : f32
    %187 = vector.broadcast %cst_135 : f32 to vector<2x128xf32>
    %188 = arith.maximumf %186, %187 : vector<2x128xf32>
    %c0_136 = arith.constant 0 : index
    %c0_137 = arith.constant 0 : index
    %189 = vector.load %arg23[%c0_136, %c0_137] : memref<128x256xf32, #tpu.memory_space<vmem>>, vector<128x256xf32>
    %cst_138 = arith.constant dense<0.000000e+00> : vector<2x256xf32>
    %190 = tpu.matmul %188, %189, %cst_138 {dimension_numbers = #tpu.dot_dimension_numbers<[1], [0], [0], [1], [0, 0, 1, 1], [], []>} : vector<2x128xf32>, vector<128x256xf32>, vector<2x256xf32> -> vector<2x256xf32>
    %c0_139 = arith.constant 0 : index
    %c0_140 = arith.constant 0 : index
    %191 = vector.load %arg24[%c0_139, %c0_140] : memref<1x256xf32, #tpu.memory_space<vmem>>, vector<1x256xf32>
    %192 = vector.broadcast %191 : vector<1x256xf32> to vector<2x256xf32>
    %193 = arith.addf %190, %192 : vector<2x256xf32>
    %cst_141 = arith.constant 0.000000e+00 : f32
    %194 = vector.broadcast %cst_141 : f32 to vector<2x256xf32>
    %195 = arith.maximumf %193, %194 : vector<2x256xf32>
    %c0_142 = arith.constant 0 : index
    %c0_143 = arith.constant 0 : index
    %196 = vector.load %arg25[%c0_142, %c0_143] : memref<256x2xf32, #tpu.memory_space<vmem>>, vector<256x2xf32>
    %cst_144 = arith.constant dense<0.000000e+00> : vector<2x2xf32>
    %197 = tpu.matmul %195, %196, %cst_144 {dimension_numbers = #tpu.dot_dimension_numbers<[1], [0], [0], [1], [0, 0, 1, 1], [], []>} : vector<2x256xf32>, vector<256x2xf32>, vector<2x2xf32> -> vector<2x2xf32>
    %c0_145 = arith.constant 0 : index
    %c0_146 = arith.constant 0 : index
    %198 = vector.load %arg26[%c0_145, %c0_146] : memref<1x2xf32, #tpu.memory_space<vmem>>, vector<1x2xf32>
    %199 = vector.broadcast %198 : vector<1x2xf32> to vector<2x2xf32>
    %200 = arith.addf %197, %199 : vector<2x2xf32>
    %c0_147 = arith.constant 0 : index
    %c0_148 = arith.constant 0 : index
    %201 = vector.load %arg27[%c0_147, %c0_148] : memref<2x2xf32, #tpu.memory_space<vmem>>, vector<2x2xf32>
    tpu.vector_store %arg27[%c0_147, %c0_148], %200 {strides = array<i32>} : memref<2x2xf32, #tpu.memory_space<vmem>>, vector<2x2xf32>,
    return
  }
}

</mosaic_0001>

<bundles_post_ra>
// kernel: critic_forward.1
= control target key start
LH: loop header
LB: loop body
LE: loop exit
PB: predicated region body
PF: predicated region fallthrough
CT: control target
= control target key end

     0   :  { %s3604_s0 = inlined_call_operand.vmem [shape: f32[128,9], index: 0, kind: input, shape index: {}]   ;;  %s3605_s1 = inlined_call_operand.vmem [shape: f32[2,6], index: 1, kind: input, shape index: {}]   ;;  %s3606_s2 = inlined_call_operand.vmem [shape: f32[2,64], index: 2, kind: input, shape index: {}]   ;;  %s3607_s3 = inlined_call_operand.vmem [shape: f32[2,64], index: 3, kind: input, shape index: {}]   ;;  %s3608_s4 = inlined_call_operand.vmem [shape: f32[288,128], index: 4, kind: input, shape index: {}]   ;;  %s3609_s5 = inlined_call_operand.hbm [shape: f32[72,32], index: 5, kind: input, shape index: {}]   ;;  %s3610_s6 = inlined_call_operand.vmem [shape: f32[8,8], index: 6, kind: input, shape index: {}]   ;;  %s3611_s7 = inlined_call_operand.hbm [shape: f32[9,32], index: 7, kind: input, shape index: {}]   ;;  %s3612_s8 = inlined_call_operand.hbm [shape: f32[1,32], index: 8, kind: input, shape index: {}]   ;;  %s3613_s9 = inlined_call_operand.vmem [shape: f32[9,32,32], index: 9, kind: input, shape index: {}]   ;;  %s3614_s10 = inlined_call_operand.hbm [shape: f32[1,32], index: 10, kind: input, shape index: {}]   ;;  %s3615_s11 = inlined_call_operand.vmem [shape: f32[9,32,32], index: 11, kind: input, shape index: {}]   ;;  %s3616_s12 = inlined_call_operand.hbm [shape: f32[1,32], index: 12, kind: input, shape index: {}]   ;;  %s3617_s13 = inlined_call_operand.vmem [shape: f32[4,32,32], index: 13, kind: input, shape index: {}]   ;;  %s3618_s14 = inlined_call_operand.hbm [shape: f32[1,32], index: 14, kind: input, shape index: {}]   ;;  %s3619_s15 = inlined_call_operand.hbm [shape: f32[32,32], index: 15, kind: input, shape index: {}]   ;;  %s3620_s16 = inlined_call_operand.hbm [shape: f32[1,32], index: 16, kind: input, shape index: {}]   ;;  %s3621_s17 = inlined_call_operand.hbm [shape: f32[32,256], index: 17, kind: input, shape index: {}]   ;;  %s3622_s18 = inlined_call_operand.vmem [shape: f32[64,256], index: 18, kind: input, shape index: {}]   ;;  %s3623_s19 = inlined_call_operand.hbm [shape: f32[1,256], index: 19, kind: input, shape index: {}]   ;;  %s3624_s20 = inlined_call_operand.hbm [shape: f32[64,128], index: 20, kind: input, shape index: {}]   ;;  %s3625_s21 = inlined_call_operand.hbm [shape: f32[6,128], index: 21, kind: input, shape index: {}]   ;;  %s3626_s22 = inlined_call_operand.hbm [shape: f32[1,128], index: 22, kind: input, shape index: {}]   ;;  %s3627_s23 = inlined_call_operand.vmem [shape: f32[128,256], index: 23, kind: input, shape index: {}]   ;;  %s3628_s24 = inlined_call_operand.hbm [shape: f32[1,256], index: 24, kind: input, shape index: {}]   ;;  %s3629_s25 = inlined_call_operand.vmem [shape: f32[256,2], index: 25, kind: input, shape index: {}]   ;;  %s3630_s26 = inlined_call_operand.hbm [shape: f32[1,2], index: 26, kind: input, shape index: {}]   ;;  %s3631_s27 = inlined_call_operand.vmem [shape: f32[2,2], index: 27, kind: output, shape index: {}]  }
   0x1   :  { %3640 = sst [smem:[#allocation33_spill]] %s3604_s0 }
   0x2   :  { %3641 = sst [smem:[#allocation34_spill]] %s3605_s1 }
   0x3   :  { %3642 = sst [smem:[#allocation35_spill]] %s3606_s2 }
   0x4   :  { %3643 = sst [smem:[#allocation36_spill]] %s3607_s3 }
   0x5   :  { %3644 = sst [smem:[#allocation37_spill]] %s3608_s4 }
   0x6   :  { %3645 = sst [smem:[#allocation38_spill]] %s3609_s5 }
   0x7   :  { %3646 = sst [smem:[#allocation39_spill]] %s3610_s6 }
   0x8   :  { %3647 = sst [smem:[#allocation40_spill]] %s3611_s7 }
   0x9   :  { %3648 = sst [smem:[#allocation41_spill]] %s3612_s8 }
   0xa   :  { %3649 = sst [smem:[#allocation42_spill]] %s3613_s9 }
   0xb   :  { %3650 = sst [smem:[#allocation43_spill]] %s3614_s10 }
   0xc   :  { %3651 = sst [smem:[#allocation44_spill]] %s3615_s11 }
   0xd   :  { %32 = vsyncpa [#allocation3], 0 }
   0xe   :  { %33 = vsyncpa [#allocation5], 0 }
   0xf   :  { %34 = vsyncpa [#allocation8], 0 }
  0x10   :  { %35 = vsyncpa [#allocation11], 0 }
  0x11   :  { %36 = vsyncpa [#allocation14], 0 }
  0x12   :  { %37 = vsyncpa [#allocation17], 0 }
  0x13   :  { %38 = vsyncpa [#allocation20], 0 }
  0x14   :  { %39 = vsyncpa [#allocation23], 0  ;;  %s3652_s8 = sld [smem:[#allocation40_spill]]  ;;  %s2587_s9 = smov [#allocation4]  }
  0x15   :  { %s71_s5 = sshll.u32 %s2587_s9, 4  ;;  %s3653_s10 = sld [smem:[#allocation43_spill]]  ;;  %s72_s5 = int_to_ptr.vmem [resolvable:$true] %s71_s5 }
  0x16   :  { %s3636_s1 = smov 128   ;;  %s3638_s6 = smov 8  }
  0x17   :  { %s2590_s11 = smov [#allocation7]   ;;  %s122_s4 = sshll.u32 %s3618_s14, 4  ;;  %s123_s4 = int_to_ptr.hbm [resolvable:$true] %s122_s4 }
  0x18   :  { %s98_s2 = sshll.u32 %s2590_s11, 4  ;;  %s146_s28 = sshll.u32 %s3620_s16, 4  ;;  %s99_s2 = int_to_ptr.vmem [resolvable:$true] %s98_s2  ;;  %s147_s28 = int_to_ptr.hbm [resolvable:$true] %s146_s28 }
  0x19   :  { %s2591_s0 = smov [#allocation10]   ;;  %s2593_s3 = smov [#allocation16]  }
  0x1a   :  { %s69_s30 = sshll.u32 %s3652_s8, 4  ;;  %s174_s16 = sshll.u32 %s2593_s3, 4  ;;  %s70_s30 = int_to_ptr.hbm [resolvable:$true] %s69_s30  ;;  %s175_s16 = int_to_ptr.vmem [resolvable:$true] %s174_s16 }
  0x1b   :  { %s96_s29 = sshll.u32 %s3653_s10, 4  ;;  %s124_s10 = sshll.u32 %s2591_s0, 4  ;;  %s97_s29 = int_to_ptr.hbm [resolvable:$true] %s96_s29  ;;  %s125_s10 = int_to_ptr.vmem [resolvable:$true] %s124_s10 }
  0x1c   :  { %77 = dma.hbm_to_vmem [thread:$0]  %s70_s30, 256, %s72_s5, [#allocation5], %s3636_s1, %s3636_s1, %s3638_s6  }
  0x1d   :  { %101 = dma.hbm_to_vmem [thread:$0]  %s97_s29, 16, %s99_s2, [#allocation8]  }
  0x1e   :  { %127 = dma.hbm_to_vmem [thread:$0]  %s123_s4, 16, %s125_s10, [#allocation11]  }
  0x1f   :  { %s2592_s30 = smov [#allocation13]   ;;  %s172_s6 = sshll.u32 %s3623_s19, 4  ;;  %s173_s6 = int_to_ptr.hbm [resolvable:$true] %s172_s6 }
  0x20   :  { %s148_s5 = sshll.u32 %s2592_s30, 4  ;;  %s196_s2 = sshll.u32 %s3625_s21, 4  ;;  %s149_s5 = int_to_ptr.vmem [resolvable:$true] %s148_s5  ;;  %s197_s2 = int_to_ptr.hbm [resolvable:$true] %s196_s2 }
  0x21   :  { %151 = dma.hbm_to_vmem [thread:$0]  %s147_s28, 16, %s149_s5, [#allocation14]  }
  0x22   :  { %177 = dma.hbm_to_vmem [thread:$0]  %s173_s6, 32, %s175_s16, [#allocation17]  }
  0x23   :  { %s2594_s7 = smov [#allocation19]   ;;  %s220_s0 = sshll.u32 %s3628_s24, 4  ;;  %s221_s0 = int_to_ptr.hbm [resolvable:$true] %s220_s0 }
  0x24   :  { %s198_s4 = sshll.u32 %s2594_s7, 4  ;;  %s3654_s28 = sld [smem:[#allocation38_spill]]  ;;  %s199_s4 = int_to_ptr.vmem [resolvable:$true] %s198_s4 }
  0x25   :  { %201 = dma.hbm_to_vmem [thread:$0]  %s197_s2, 128, %s199_s4, [#allocation20]  }
  0x26   :  { %s2595_s30 = smov [#allocation22]   ;;  %s2596_s5 = smov [#allocation2]  }
  0x27   :  { %s222_s21 = sshll.u32 %s2595_s30, 4  ;;  %s56_s6 = sshll.u32 %s2596_s5, 4  ;;  %s223_s21 = int_to_ptr.vmem [resolvable:$true] %s222_s21  ;;  %s57_s6 = int_to_ptr.vmem [resolvable:$true] %s56_s6 }
  0x28   :  { %225 = dma.hbm_to_vmem [thread:$0]  %s221_s0, 32, %s223_s21, [#allocation23]  }
  0x29   :  { %s3655_s29 = sld [smem:[#allocation41_spill]]  ;;  %s3656_s24 = smov 8  }
  0x2a   :  { %s54_s10 = sshll.u32 %s3654_s28, 4  ;;  %s3657_s16 = smov 128   ;;  %s55_s10 = int_to_ptr.hbm [resolvable:$true] %s54_s10 }
  0x2b   :  { %62 = dma.hbm_to_vmem [thread:$0]  %s55_s10, 1152, %s57_s6, [#allocation3], %s3657_s16, %s3657_s16, %s3656_s24  }
  0x2c   :  { %s109_s4 = sshll.u32 %s3616_s12, 4  ;;  %s2597_s8 = smov [#allocation6]   ;;  %s110_s4 = int_to_ptr.hbm [resolvable:$true] %s109_s4 }
  0x2d   :  { %s85_s9 = sshll.u32 %s2597_s8, 4  ;;  %s2598_s0 = smov [#allocation9]   ;;  %s86_s9 = int_to_ptr.vmem [resolvable:$true] %s85_s9 }
  0x2e   :  { %s111_s19 = sshll.u32 %s2598_s0, 4  ;;  %s132_s30 = sshll.u32 %s3619_s15, 4  ;;  %s112_s19 = int_to_ptr.vmem [resolvable:$true] %s111_s19  ;;  %s133_s30 = int_to_ptr.hbm [resolvable:$true] %s132_s30 }
  0x2f   :  { %s83_s3 = sshll.u32 %s3655_s29, 4  ;;  %s156_s5 = sshll.u32 %s3621_s17, 4  ;;  %s84_s3 = int_to_ptr.hbm [resolvable:$true] %s83_s3  ;;  %s157_s5 = int_to_ptr.hbm [resolvable:$true] %s156_s5 }
  0x30   :  { %88 = dma.hbm_to_vmem [thread:$0]  %s84_s3, 16, %s86_s9, [#allocation5]  }
  0x31   :  { %114 = dma.hbm_to_vmem [thread:$0]  %s110_s4, 16, %s112_s19, [#allocation8]  }
  0x32   :  { %s2599_s6 = smov [#allocation12]   ;;  %s2600_s11 = smov [#allocation15]  }
  0x33   :  { %s134_s12 = sshll.u32 %s2599_s6, 4  ;;  %s158_s14 = sshll.u32 %s2600_s11, 4  ;;  %s135_s12 = int_to_ptr.vmem [resolvable:$true] %s134_s12  ;;  %s159_s14 = int_to_ptr.vmem [resolvable:$true] %s158_s14 }
  0x34   :  { %140 = dma.hbm_to_vmem [thread:$0]  %s133_s30, 512, %s135_s12, [#allocation11], %s3657_s16, %s3657_s16, %s3656_s24  }
  0x35   :  { %s2601_s29 = smov 256   ;;  %s2602_s15 = smov 16  }
  0x36   :  { %164 = dma.hbm_to_vmem [thread:$0]  %s157_s5, 1024, %s159_s14, [#allocation14], %s2601_s29, %s2601_s29, %s2602_s15  }
  0x37   :  { %s182_s7 = sshll.u32 %s3624_s20, 4  ;;  %s2603_s17 = smov [#allocation18]   ;;  %s183_s7 = int_to_ptr.hbm [resolvable:$true] %s182_s7 }
  0x38   :  { %s184_s4 = sshll.u32 %s2603_s17, 4  ;;  %s207_s0 = sshll.u32 %s3626_s22, 4  ;;  %s185_s4 = int_to_ptr.vmem [resolvable:$true] %s184_s4  ;;  %s208_s0 = int_to_ptr.hbm [resolvable:$true] %s207_s0 }
  0x39   :  { %190 = dma.hbm_to_vmem [thread:$0]  %s183_s7, 1024, %s185_s4, [#allocation17], %s3657_s16, %s3657_s16, %s3656_s24  }
  0x3a   :  { %s2604_s19 = smov [#allocation21]   ;;  %s233_s21 = sshll.u32 %s3630_s26, 4  ;;  %s234_s21 = int_to_ptr.hbm [resolvable:$true] %s233_s21 }
  0x3b   :  { %s209_s1 = sshll.u32 %s2604_s19, 4  ;;  %s2605_s20 = smov [#allocation24]   ;;  %s210_s1 = int_to_ptr.vmem [resolvable:$true] %s209_s1 }
  0x3c   :  { %212 = dma.hbm_to_vmem [thread:$0]  %s208_s0, 16, %s210_s1, [#allocation20]  }
  0x3d   :  { %s235_s10 = sshll.u32 %s2605_s20, 4  ;;  %s236_s10 = int_to_ptr.vmem [resolvable:$true] %s235_s10 }
  0x3e   :  { %238 = dma.hbm_to_vmem [thread:$0]  %s234_s21, 16, %s236_s10, [#allocation23]  }
  0x3f   :  { %2571 = dma.done.wait [#allocation3], 1152  }
  0x40   :  { %2572 = vsyncadd [#allocation3], 4294966144 }
  0x41   :  { %2573 = dma.done.wait [#allocation5], 272  }
  0x42   :  { %2574 = vsyncadd [#allocation5], 4294967024 }
  0x43   :  { %2575 = dma.done.wait [#allocation8], 32  }
  0x44   :  { %2576 = vsyncadd [#allocation8], 4294967264 }
  0x45   :  { %2577 = dma.done.wait [#allocation11], 528  }
  0x46   :  { %2578 = vsyncadd [#allocation11], 4294966768 }
  0x47   :  { %2579 = dma.done.wait [#allocation14], 1040  }
  0x48   :  { %2580 = vsyncadd [#allocation14], 4294966256 }
  0x49   :  { %2581 = dma.done.wait [#allocation17], 1056  }
  0x4a   :  { %2582 = vsyncadd [#allocation17], 4294966240 }
  0x4b   :  { %2583 = dma.done.wait [#allocation20], 144  }
  0x4c   :  { %2584 = vsyncadd [#allocation20], 4294967152 }
  0x4d   :  { %2585 = dma.done.wait [#allocation23], 48  }
  0x4e   :  { %2586 = vsyncadd [#allocation23], 4294967248  ;;  %vm370_vm0 = vcmask 1040384   ;;  %v316_v0 = vld [vmem:[#allocation4 + $0x8] sm:$0x1]  ;;  %v315_v1 = vld [vmem:[#allocation4] sm:$0xff] }
  0x4f   :  { %1992 = vmatpush.msk.msra.mxu0 %vm370_vm0, %v316_v0  ;;  %s3658_s24 = sld [smem:[#allocation33_spill]]  ;;  %vm321_vm1 = vcmask 72704   ;;  %2154 = vmatpush.msk.msra.mxu2 %vm370_vm0, %v316_v0  ;;  %v2192_v28 = vld [vmem:[#allocation6] ss:$0 sm:$0xff]  ;;  %vm625_vm2 = vcmask 261120   ;;  %vm1405_vm3 = vcmask 64512  }
  0x50   :  { %s3659_s29 = sld [smem:[#allocation37_spill]]  ;;  %vm1605_vm4 = vcmask 523264   ;;  %s2606_s19 = smov 64   ;;  %vm1767_vm13 = vcmask 1045504   ;;  %vm1763_vm14 = vcmask 48128   ;;  %vm1978_vm15 = vcmask 9216  }
  0x51   :  { %389 = vmatpush.msra.mxu0 %v315_v1  ;;  %2155 = vmatpush.msra.mxu2 %v315_v1  ;;  %s3661_s6 = sld [smem:[#allocation44_spill]] }
  0x52   :  { %s3663_s14 = sld [smem:[#allocation35_spill]] }
  0x53   :  { %s3664_s0 = sld [smem:[#allocation36_spill]] }
  0x54   :  { %s3665_s28 = sld [smem:[#allocation34_spill]] }
  0x55   :  { %v299_v2 = vld [vmem:[%s3658_s24] sm:$0xff]  ;;  %v300_v3 = vld [vmem:[%s3658_s24 + $0x8] sm:$0xff]  ;;  %v301_v4 = vld [vmem:[%s3658_s24 + $0x10] sm:$0xff] }
  0x56   :  { %1993 = vmatmul.msk.f32.vlgmr.msra.gmra.mxu0 %vm321_vm1, %v299_v2  ;;  %v302_v5 = vld [vmem:[%s3658_s24 + $0x18] sm:$0xff]  ;;  %v303_v6 = vld [vmem:[%s3658_s24 + $0x20] sm:$0xff]  ;;  %v304_v7 = vld [vmem:[%s3658_s24 + $0x28] sm:$0xff] }
  0x57   :  { %v305_v8 = vld [vmem:[%s3658_s24 + $0x30] sm:$0xff]  ;;  %v306_v9 = vld [vmem:[%s3658_s24 + $0x38] sm:$0xff]  ;;  %v307_v10 = vld [vmem:[%s3658_s24 + $0x40] sm:$0xff] }
  0x58   :  { %v308_v11 = vld [vmem:[%s3658_s24 + $0x48] sm:$0xff]  ;;  %v314_v12 = vld [vmem:[%s3658_s24 + $0x78] sm:$0xff]  ;;  %v309_v13 = vld [vmem:[%s3658_s24 + $0x50] sm:$0xff] }
  0x59   :  { %2008 = vmatmul.msk.f32.vlgmr.msra.gmra.mxu2 %vm321_vm1, %v314_v12  ;;  %v310_v14 = vld [vmem:[%s3658_s24 + $0x58] sm:$0xff]  ;;  %v311_v15 = vld [vmem:[%s3658_s24 + $0x60] sm:$0xff]  ;;  %v312_v16 = vld [vmem:[%s3658_s24 + $0x68] sm:$0xff] }
  0x5a   :  { %v313_v17 = vld [vmem:[%s3658_s24 + $0x70] sm:$0xff]  ;;  %s3660_s24 = sld [smem:[#allocation42_spill]] }
  0x5b   :  { %v465_v12 = vld [vmem:[%s3659_s29 + $0x50] sm:$0xff] }
  0x5e   :  { %1994 = vmatmul.msk.f32.gmra.mxu0 %vm321_vm1, %v300_v3  ;;  %v459_v3 = vld [vmem:[%s3659_s29 + $0x20] sm:$0xff] }
  0x66   :  { %1995 = vmatmul.msk.f32.gmra.mxu0 %vm321_vm1, %v301_v4  ;;  %v460_v4 = vld [vmem:[%s3659_s29 + $0x28] sm:$0xff] }
  0x6e   :  { %1996 = vmatmul.msk.f32.gmra.mxu0 %vm321_vm1, %v302_v5  ;;  %v461_v5 = vld [vmem:[%s3659_s29 + $0x30] sm:$0xff] }
  0x76   :  { %1997 = vmatmul.msk.f32.gmra.mxu0 %vm321_vm1, %v303_v6  ;;  %v462_v6 = vld [vmem:[%s3659_s29 + $0x38] sm:$0xff] }
  0x7e   :  { %1998 = vmatmul.msk.f32.gmra.mxu0 %vm321_vm1, %v304_v7  ;;  %v455_v7 = vld [vmem:[%s3659_s29] sm:$0xff] }
  0x86   :  { %1999 = vmatmul.msk.f32.gmra.mxu0 %vm321_vm1, %v305_v8  ;;  %v463_v8 = vld [vmem:[%s3659_s29 + $0x40] sm:$0xff] }
  0x8e   :  { %2000 = vmatmul.msk.f32.gmra.mxu0 %vm321_vm1, %v306_v9  ;;  %v456_v9 = vld [vmem:[%s3659_s29 + $0x8] sm:$0xff] }
  0x96   :  { %2001 = vmatmul.msk.f32.gmra.mxu0 %vm321_vm1, %v307_v10  ;;  %v464_v10 = vld [vmem:[%s3659_s29 + $0x48] sm:$0xff] }
  0x9e   :  { %2002 = vmatmul.msk.f32.gmra.mxu0 %vm321_vm1, %v308_v11  ;;  %v457_v11 = vld [vmem:[%s3659_s29 + $0x10] sm:$0xff] }
  0xa6   :  { %2003 = vmatmul.msk.f32.gmra.mxu0 %vm321_vm1, %v309_v13  ;;  %v458_v13 = vld [vmem:[%s3659_s29 + $0x18] sm:$0xff] }
  0xae   :  { %2004 = vmatmul.msk.f32.gmra.mxu0 %vm321_vm1, %v310_v14  ;;  %v466_v14 = vld [vmem:[%s3659_s29 + $0x58] sm:$0xff] }
  0xb6   :  { %2005 = vmatmul.msk.f32.gmra.mxu0 %vm321_vm1, %v311_v15  ;;  %v467_v15 = vld [vmem:[%s3659_s29 + $0x60] sm:$0xff] }
  0xbe   :  { %2006 = vmatmul.msk.f32.gmra.mxu0 %vm321_vm1, %v312_v16  ;;  %v468_v16 = vld [vmem:[%s3659_s29 + $0x68] sm:$0xff] }
  0xc6   :  { %2007 = vmatmul.msk.f32.gmra.mxu0 %vm321_vm1, %v313_v17  ;;  %v469_v17 = vld [vmem:[%s3659_s29 + $0x70] sm:$0xff] }
  0xd3   :  { %v2868_v18 = vpop.f32.mrf.mxu0 }
  0xd4   :  { %v392_v63 = vadd.f32 %v2192_v28, %v2868_v18  ;;  %v470_v18 = vld [vmem:[%s3659_s29 + $0x78] sm:$0xff] }
  0xd6   :  { %v439_v2 = vmax.f32 %v392_v63, 0.0 }
  0xdb   :  { %v2870_v19 = vpop.f32.mrf.mxu0 }
  0xdc   :  { %v436_v29 = vpop.f32.mrf.mxu2  ;;  %v395_v61 = vadd.f32 %v2192_v28, %v2870_v19  ;;  %v471_v19 = vld [vmem:[%s3659_s29 + $0x80] sm:$0xff] }
  0xdd   :  { %v437_v30 = vadd.f32 %v2192_v28, %v436_v29 }
  0xde   :  { %v440_v1 = vmax.f32 %v395_v61, 0.0 }
  0xdf   :  { %v454_v32 = vmax.f32 %v437_v30, 0.0  ;;  %v478_v30 = vld [vmem:[%s3659_s29 + $0xb8] sm:$0xff] }
  0xe1   :  { %491 = vmatpush.msrb.mxu0 %v454_v32  ;;  %2156 = vmatpush.msra.mxu1 %v454_v32  ;;  %v619_v32 = vld [vmem:[%s3660_s24 + $0x18] sm:$0xff] }
  0xe2   :  { %691 = vmatpush.msra.mxu3 %v619_v32  ;;  %v2056_v32 = vld [vmem:[%s3660_s24 + $0x58] sm:$0xff] }
  0xe3   :  { %v397_v20 = vpop.f32.mrf.mxu0 }
  0xe4   :  { %v398_v59 = vadd.f32 %v2192_v28, %v397_v20  ;;  %v472_v20 = vld [vmem:[%s3659_s29 + $0x88] sm:$0xff] }
  0xe6   :  { %v441_v0 = vmax.f32 %v398_v59, 0.0 }
  0xeb   :  { %v400_v21 = vpop.f32.mrf.mxu0 }
  0xec   :  { %v401_v57 = vadd.f32 %v2192_v28, %v400_v21  ;;  %v473_v21 = vld [vmem:[%s3659_s29 + $0x90] sm:$0xff] }
  0xee   :  { %v442_v62 = vmax.f32 %v401_v57, 0.0 }
  0xf3   :  { %v403_v22 = vpop.f32.mrf.mxu0 }
  0xf4   :  { %v404_v55 = vadd.f32 %v2192_v28, %v403_v22  ;;  %v474_v22 = vld [vmem:[%s3659_s29 + $0x98] sm:$0xff] }
  0xf6   :  { %v443_v60 = vmax.f32 %v404_v55, 0.0 }
  0xfb   :  { %v406_v23 = vpop.f32.mrf.mxu0 }
  0xfc   :  { %v407_v53 = vadd.f32 %v2192_v28, %v406_v23 }
  0xfe   :  { %v444_v58 = vmax.f32 %v407_v53, 0.0  ;;  %v2034_v53 = vld [vmem:[%s3660_s24 + $0x88] sm:$0xff] }
 0x103   :  { %v409_v24 = vpop.f32.mrf.mxu0 }
 0x104   :  { %v410_v51 = vadd.f32 %v2192_v28, %v409_v24  ;;  %v475_v24 = vld [vmem:[%s3659_s29 + $0xa0] sm:$0xff] }
 0x106   :  { %v445_v56 = vmax.f32 %v410_v51, 0.0  ;;  %v2036_v51 = vld [vmem:[%s3660_s24 + $0x98] sm:$0xff] }
 0x10b   :  { %v412_v25 = vpop.f32.mrf.mxu0 }
 0x10c   :  { %v413_v49 = vadd.f32 %v2192_v28, %v412_v25 }
 0x10e   :  { %v446_v54 = vmax.f32 %v413_v49, 0.0 }
 0x113   :  { %v415_v26 = vpop.f32.mrf.mxu0 }
 0x114   :  { %v416_v47 = vadd.f32 %v2192_v28, %v415_v26  ;;  %v476_v26 = vld [vmem:[%s3659_s29 + $0xa8] sm:$0xff] }
 0x116   :  { %v447_v52 = vmax.f32 %v416_v47, 0.0  ;;  %v481_v47 = vld [vmem:[%s3659_s29 + $0xd0] sm:$0xff] }
 0x11b   :  { %v418_v27 = vpop.f32.mrf.mxu0 }
 0x11c   :  { %v419_v45 = vadd.f32 %v2192_v28, %v418_v27 }
 0x11e   :  { %v448_v50 = vmax.f32 %v419_v45, 0.0 }
 0x123   :  { %v421_v31 = vpop.f32.mrf.mxu0 }
 0x124   :  { %v422_v43 = vadd.f32 %v2192_v28, %v421_v31  ;;  %v2012_v31 = vld [vmem:[%s3660_s24 + $0x78] sm:$0xff] }
 0x125   :  { %650 = vmatpush.msrb.mxu2 %v2012_v31  ;;  %v2060_v31 = vld [vmem:[%s3660_s24 + $0xb8] sm:$0xff] }
 0x126   :  { %v449_v48 = vmax.f32 %v422_v43, 0.0 }
 0x12b   :  { %v424_v33 = vpop.f32.mrf.mxu0 }
 0x12c   :  { %v425_v41 = vadd.f32 %v2192_v28, %v424_v33  ;;  %v2011_v33 = vld [vmem:[%s3660_s24 + $0x70] sm:$0xff] }
 0x12d   :  { %651 = vmatpush.msrb.mxu2 %v2011_v33  ;;  %v2059_v33 = vld [vmem:[%s3660_s24 + $0xb0] sm:$0xff] }
 0x12e   :  { %v450_v46 = vmax.f32 %v425_v41, 0.0  ;;  %v479_v41 = vld [vmem:[%s3659_s29 + $0xc0] sm:$0xff] }
 0x133   :  { %v427_v34 = vpop.f32.mrf.mxu0 }
 0x134   :  { %v428_v39 = vadd.f32 %v2192_v28, %v427_v34  ;;  %v618_v34 = vld [vmem:[%s3660_s24 + $0x10] sm:$0xff] }
 0x135   :  { %692 = vmatpush.msra.mxu3 %v618_v34  ;;  %v2055_v34 = vld [vmem:[%s3660_s24 + $0x50] sm:$0xff] }
 0x136   :  { %v451_v44 = vmax.f32 %v428_v39, 0.0  ;;  %v616_v39 = vld [vmem:[%s3660_s24] sm:$0xff] }
 0x13b   :  { %v430_v35 = vpop.f32.mrf.mxu0 }
 0x13c   :  { %v431_v37 = vadd.f32 %v2192_v28, %v430_v35  ;;  %v2010_v35 = vld [vmem:[%s3660_s24 + $0x68] sm:$0xff] }
 0x13d   :  { %652 = vmatpush.msrb.mxu2 %v2010_v35  ;;  %v2058_v35 = vld [vmem:[%s3660_s24 + $0xa8] sm:$0xff] }
 0x13e   :  { %v452_v42 = vmax.f32 %v431_v37, 0.0  ;;  %v617_v37 = vld [vmem:[%s3660_s24 + $0x8] sm:$0xff] }
 0x13f   :  { %693 = vmatpush.msra.mxu3 %v617_v37  ;;  %v2057_v37 = vld [vmem:[%s3660_s24 + $0xa0] sm:$0xff] }
 0x141   :  { %694 = vmatpush.msra.mxu3 %v616_v39 }
 0x143   :  { %v433_v36 = vpop.f32.mrf.mxu0  ;;  %792 = vmatpush.msrb.mxu3 %v2036_v51 }
 0x144   :  { %v434_v38 = vadd.f32 %v2192_v28, %v433_v36  ;;  %v477_v28 = vld [vmem:[%s3659_s29 + $0xb0] sm:$0xff] }
 0x146   :  { %v453_v40 = vmax.f32 %v434_v38, 0.0  ;;  %v2009_v38 = vld [vmem:[%s3660_s24 + $0x60] sm:$0xff] }
 0x147   :  { %653 = vmatpush.msrb.mxu2 %v2009_v38  ;;  %v2053_v38 = vld [vmem:[%s3660_s24 + $0x40] sm:$0xff] }
 0x148   :  { %492 = vmatpush.msrb.mxu0 %v453_v40  ;;  %2157 = vmatpush.msra.mxu1 %v453_v40 }
 0x14a   :  { %493 = vmatpush.msrb.mxu0 %v452_v42  ;;  %2158 = vmatpush.msra.mxu1 %v452_v42 }
 0x14c   :  { %494 = vmatpush.msrb.mxu0 %v451_v44  ;;  %2159 = vmatpush.msra.mxu1 %v451_v44  ;;  %v480_v44 = vld [vmem:[%s3659_s29 + $0xc8] sm:$0xff] }
 0x14e   :  { %495 = vmatpush.msrb.mxu0 %v450_v46  ;;  %2160 = vmatpush.msra.mxu1 %v450_v46 }
 0x150   :  { %496 = vmatpush.msrb.mxu0 %v449_v48  ;;  %2161 = vmatpush.msra.mxu1 %v449_v48 }
 0x152   :  { %497 = vmatpush.msrb.mxu0 %v448_v50  ;;  %2162 = vmatpush.msra.mxu1 %v448_v50  ;;  %v482_v50 = vld [vmem:[%s3659_s29 + $0xd8] sm:$0xff] }
 0x154   :  { %498 = vmatpush.msrb.mxu0 %v447_v52  ;;  %2163 = vmatpush.msra.mxu1 %v447_v52  ;;  %v2035_v52 = vld [vmem:[%s3660_s24 + $0x90] sm:$0xff] }
 0x155   :  { %793 = vmatpush.msrb.mxu3 %v2035_v52 }
 0x156   :  { %499 = vmatpush.msrb.mxu0 %v446_v54  ;;  %2164 = vmatpush.msra.mxu1 %v446_v54  ;;  %v2033_v54 = vld [vmem:[%s3660_s24 + $0x80] sm:$0xff] }
 0x157   :  { %794 = vmatpush.msrb.mxu3 %v2034_v53 }
 0x158   :  { %500 = vmatpush.msrb.mxu0 %v445_v56  ;;  %2165 = vmatpush.msra.mxu1 %v445_v56  ;;  %v483_v56 = vld [vmem:[%s3659_s29 + $0xe0] sm:$0xff] }
 0x159   :  { %795 = vmatpush.msrb.mxu3 %v2033_v54 }
 0x15a   :  { %501 = vmatpush.msrb.mxu0 %v444_v58  ;;  %2166 = vmatpush.msra.mxu1 %v444_v58  ;;  %v484_v58 = vld [vmem:[%s3659_s29 + $0xe8] sm:$0xff] }
 0x15c   :  { %502 = vmatpush.msrb.mxu0 %v443_v60  ;;  %2167 = vmatpush.msra.mxu1 %v443_v60  ;;  %v485_v60 = vld [vmem:[%s3659_s29 + $0xf0] sm:$0xff] }
 0x15e   :  { %503 = vmatpush.msrb.mxu0 %v442_v62  ;;  %2168 = vmatpush.msra.mxu1 %v442_v62  ;;  %v486_v62 = vld [vmem:[%s3659_s29 + $0xf8] sm:$0xff] }
 0x160   :  { %504 = vmatpush.msrb.mxu0 %v441_v0  ;;  %2169 = vmatpush.msra.mxu1 %v441_v0  ;;  %v487_v0 = vld [vmem:[%s3659_s29 + $0x100] sm:$0xff] }
 0x162   :  { %505 = vmatpush.msrb.mxu0 %v440_v1  ;;  %2170 = vmatpush.msra.mxu1 %v440_v1 }
 0x164   :  { %506 = vmatpush.msrb.mxu0 %v439_v2  ;;  %2171 = vmatpush.msra.mxu1 %v439_v2  ;;  %v488_v2 = vld [vmem:[%s3659_s29 + $0x108] sm:$0xff] }
 0x165   :  { %519 = vmatmul.f32.vlgmr.msra.gmra.mxu1 %v459_v3  ;;  %507 = vmatmul.f32.vlgmr.msrb.gmra.mxu0 %v455_v7  ;;  %v2024_v7 = vld [vmem:[%s3660_s24 + $0xd8] sm:$0xff] }
 0x166   :  { %737 = vmatpush.msra.mxu2 %v2024_v7 }
 0x16d   :  { %522 = vmatmul.f32.gmra.mxu1 %v460_v4  ;;  %510 = vmatmul.f32.gmra.mxu0 %v456_v9  ;;  %v489_v4 = vld [vmem:[%s3659_s29 + $0x110] sm:$0xff]  ;;  %v2022_v9 = vld [vmem:[%s3660_s24 + $0xc8] sm:$0xff] }
 0x175   :  { %525 = vmatmul.f32.gmra.mxu1 %v461_v5  ;;  %513 = vmatmul.f32.gmra.mxu0 %v457_v11 }
 0x17d   :  { %528 = vmatmul.f32.gmra.mxu1 %v462_v6  ;;  %516 = vmatmul.f32.gmra.mxu0 %v458_v13  ;;  %v490_v6 = vld [vmem:[%s3659_s29 + $0x118] sm:$0xff] }
 0x185   :  { %531 = vmatmul.f32.gmra.mxu1 %v463_v8  ;;  %v2023_v8 = vld [vmem:[%s3660_s24 + $0xd0] sm:$0xff] }
 0x186   :  { %738 = vmatpush.msra.mxu2 %v2023_v8 }
 0x188   :  { %739 = vmatpush.msra.mxu2 %v2022_v9 }
 0x18d   :  { %534 = vmatmul.f32.gmra.mxu1 %v464_v10  ;;  %v2021_v10 = vld [vmem:[%s3660_s24 + $0xc0] sm:$0xff] }
 0x18e   :  { %740 = vmatpush.msra.mxu2 %v2021_v10 }
 0x195   :  { %537 = vmatmul.f32.gmra.mxu1 %v465_v12 }
 0x19d   :  { %540 = vmatmul.f32.gmra.mxu1 %v466_v14 }
 0x1a5   :  { %543 = vmatmul.f32.gmra.mxu1 %v467_v15  ;;  %v2032_v15 = vld [vmem:[%s3660_s24 + $0x38] sm:$0xff] }
 0x1ad   :  { %546 = vmatmul.f32.gmra.mxu1 %v468_v16  ;;  %v2048_v16 = vld [vmem:[%s3660_s24 + $0xf8] sm:$0xff] }
 0x1b5   :  { %549 = vmatmul.f32.gmra.mxu1 %v469_v17  ;;  %v2031_v17 = vld [vmem:[%s3660_s24 + $0x30] sm:$0xff] }
 0x1bd   :  { %552 = vmatmul.f32.gmra.mxu1 %v470_v18  ;;  %v2047_v18 = vld [vmem:[%s3660_s24 + $0xf0] sm:$0xff] }
 0x1c5   :  { %555 = vmatmul.f32.gmra.mxu1 %v471_v19  ;;  %v2030_v19 = vld [vmem:[%s3660_s24 + $0x28] sm:$0xff] }
 0x1cd   :  { %558 = vmatmul.f32.gmra.mxu1 %v472_v20  ;;  %v2046_v20 = vld [vmem:[%s3660_s24 + $0xe8] sm:$0xff] }
 0x1d5   :  { %561 = vmatmul.f32.gmra.mxu1 %v473_v21  ;;  %v2029_v21 = vld [vmem:[%s3660_s24 + $0x20] sm:$0xff] }
 0x1dd   :  { %564 = vmatmul.f32.gmra.mxu1 %v474_v22  ;;  %v2045_v22 = vld [vmem:[%s3660_s24 + $0xe0] sm:$0xff] }
 0x1e2   :  { %v2934_v23 = vpop.f32.mrf.mxu1  ;;  %v508_v36 = vpop.f32.mrf.mxu0 }
 0x1e3   :  { %2017 = vmatmul.msk.f32.vlgmr.msra.gmra.mxu3 %vm625_vm2, %v508_v36  ;;  %v2054_v36 = vld [vmem:[%s3660_s24 + $0x48] sm:$0xff] }
 0x1e4   :  { %879 = vmatpush.msra.mxu3 %v2048_v16 }
 0x1e5   :  { %567 = vmatmul.f32.gmra.mxu1 %v475_v24 }
 0x1e6   :  { %880 = vmatpush.msra.mxu3 %v2047_v18 }
 0x1e8   :  { %881 = vmatpush.msra.mxu3 %v2046_v20 }
 0x1ea   :  { %v2939_v25 = vpop.f32.mrf.mxu1  ;;  %v511_v42 = vpop.f32.mrf.mxu0  ;;  %882 = vmatpush.msra.mxu3 %v2045_v22 }
 0x1eb   :  { %2018 = vmatmul.msk.f32.gmra.mxu3 %vm625_vm2, %v511_v42  ;;  %v2071_v42 = vld [vmem:[%s3660_s24 + $0x110] sm:$0xff] }
 0x1ed   :  { %570 = vmatmul.f32.gmra.mxu1 %v476_v26 }
 0x1f2   :  { %v2944_v27 = vpop.f32.mrf.mxu1  ;;  %v514_v45 = vpop.f32.mrf.mxu0 }
 0x1f3   :  { %2019 = vmatmul.msk.f32.gmra.mxu3 %vm625_vm2, %v514_v45 }
 0x1f5   :  { %573 = vmatmul.f32.gmra.mxu1 %v477_v28 }
 0x1fa   :  { %v2949_v29 = vpop.f32.mrf.mxu1  ;;  %v517_v48 = vpop.f32.mrf.mxu0 }
 0x1fb   :  { %2020 = vmatmul.msk.f32.gmra.mxu3 %vm625_vm2, %v517_v48 }
 0x1fd   :  { %576 = vmatmul.f32.gmra.mxu1 %v478_v30 }
 0x202   :  { %v2978_v40 = vpop.f32.mrf.mxu1 }
 0x205   :  { %579 = vmatmul.f32.gmra.mxu1 %v479_v41  ;;  %v2072_v41 = vld [vmem:[%s3660_s24 + $0x118] sm:$0xff] }
 0x206   :  { %1021 = vmatpush.msra.mxu0 %v2072_v41 }
 0x208   :  { %1022 = vmatpush.msra.mxu0 %v2071_v42 }
 0x20a   :  { %v2984_v43 = vpop.f32.mrf.mxu1 }
 0x20d   :  { %582 = vmatmul.f32.gmra.mxu1 %v480_v44  ;;  %v2070_v44 = vld [vmem:[%s3660_s24 + $0x108] sm:$0xff] }
 0x20e   :  { %1023 = vmatpush.msra.mxu0 %v2070_v44 }
 0x212   :  { %v2990_v46 = vpop.f32.mrf.mxu1 }
 0x215   :  { %585 = vmatmul.f32.gmra.mxu1 %v481_v47 }
 0x21a   :  { %v2996_v49 = vpop.f32.mrf.mxu1 }
 0x21d   :  { %588 = vmatmul.f32.gmra.mxu1 %v482_v50 }
 0x222   :  { %v544_v55 = vpop.f32.mrf.mxu1 }
 0x223   :  { %2013 = vmatmul.msk.f32.vlgmr.msrb.gmra.mxu2 %vm625_vm2, %v544_v55 }
 0x224   :  { %833 = vmatpush.msrb.mxu2 %v2032_v15 }
 0x225   :  { %591 = vmatmul.f32.gmra.mxu1 %v483_v56 }
 0x226   :  { %834 = vmatpush.msrb.mxu2 %v2031_v17 }
 0x228   :  { %835 = vmatpush.msrb.mxu2 %v2030_v19 }
 0x22a   :  { %v547_v57 = vpop.f32.mrf.mxu1  ;;  %836 = vmatpush.msrb.mxu2 %v2029_v21 }
 0x22b   :  { %2014 = vmatmul.msk.f32.gmra.mxu2 %vm625_vm2, %v547_v57 }
 0x22d   :  { %594 = vmatmul.f32.gmra.mxu1 %v484_v58 }
 0x232   :  { %v550_v59 = vpop.f32.mrf.mxu1 }
 0x233   :  { %2015 = vmatmul.msk.f32.gmra.mxu2 %vm625_vm2, %v550_v59 }
 0x235   :  { %597 = vmatmul.f32.gmra.mxu1 %v485_v60 }
 0x23a   :  { %v553_v61 = vpop.f32.mrf.mxu1 }
 0x23b   :  { %2016 = vmatmul.msk.f32.gmra.mxu2 %vm625_vm2, %v553_v61 }
 0x23d   :  { %600 = vmatmul.f32.gmra.mxu1 %v486_v62 }
 0x242   :  { %v556_v63 = vpop.f32.mrf.mxu1 }
 0x243   :  { %2037 = vmatmul.msk.f32.vlgmr.msrb.gmra.mxu3 %vm625_vm2, %v556_v63 }
 0x244   :  { %975 = vmatpush.msrb.mxu3 %v2056_v32 }
 0x245   :  { %603 = vmatmul.f32.gmra.mxu1 %v487_v0 }
 0x246   :  { %976 = vmatpush.msrb.mxu3 %v2055_v34 }
 0x248   :  { %977 = vmatpush.msrb.mxu3 %v2054_v36 }
 0x24a   :  { %v559_v1 = vpop.f32.mrf.mxu1  ;;  %978 = vmatpush.msrb.mxu3 %v2053_v38 }
 0x24b   :  { %2038 = vmatmul.msk.f32.gmra.mxu3 %vm625_vm2, %v559_v1 }
 0x24d   :  { %606 = vmatmul.f32.gmra.mxu1 %v488_v2 }
 0x252   :  { %v562_v3 = vpop.f32.mrf.mxu1 }
 0x253   :  { %2039 = vmatmul.msk.f32.gmra.mxu3 %vm625_vm2, %v562_v3 }
 0x255   :  { %609 = vmatmul.f32.gmra.mxu1 %v489_v4 }
 0x25a   :  { %v565_v5 = vpop.f32.mrf.mxu1 }
 0x25b   :  { %2040 = vmatmul.msk.f32.gmra.mxu3 %vm625_vm2, %v565_v5 }
 0x25d   :  { %612 = vmatmul.f32.gmra.mxu1 %v490_v6 }
 0x262   :  { %v3058_v11 = vpop.f32.mrf.mxu1 }
 0x26a   :  { %v3060_v12 = vpop.f32.mrf.mxu1 }
 0x272   :  { %v3062_v13 = vpop.f32.mrf.mxu1 }
 0x27a   :  { %v3064_v14 = vpop.f32.mrf.mxu1 }
 0x282   :  { %v580_v24 = vpop.f32.mrf.mxu1 }
 0x283   :  { %2025 = vmatmul.msk.f32.vlgmr.msra.gmra.mxu2 %vm625_vm2, %v580_v24 }
 0x284   :  { %934 = vmatpush.msra.mxu2 %v2060_v31 }
 0x286   :  { %935 = vmatpush.msra.mxu2 %v2059_v33 }
 0x288   :  { %936 = vmatpush.msra.mxu2 %v2058_v35 }
 0x28a   :  { %v583_v26 = vpop.f32.mrf.mxu1  ;;  %937 = vmatpush.msra.mxu2 %v2057_v37 }
 0x28b   :  { %2026 = vmatmul.msk.f32.gmra.mxu2 %vm625_vm2, %v583_v26 }
 0x292   :  { %v586_v28 = vpop.f32.mrf.mxu1 }
 0x293   :  { %2027 = vmatmul.msk.f32.gmra.mxu2 %vm625_vm2, %v586_v28 }
 0x29a   :  { %v589_v30 = vpop.f32.mrf.mxu1 }
 0x29b   :  { %2028 = vmatmul.msk.f32.gmra.mxu2 %vm625_vm2, %v589_v30 }
 0x2a2   :  { %v592_v39 = vpop.f32.mrf.mxu1 }
 0x2a3   :  { %2041 = vmatmul.msk.f32.vlgmr.msrb.gmra.mxu2 %vm625_vm2, %v2934_v23  ;;  %2049 = vmatmul.msk.f32.vlgmr.msra.gmra.mxu3 %vm625_vm2, %v592_v39  ;;  %v2069_v23 = vld [vmem:[%s3660_s24 + $0x100] sm:$0xff]  ;;  %s3662_s24 = sld [smem:[#allocation39_spill]] }
 0x2a4   :  { %1024 = vmatpush.msra.mxu0 %v2069_v23 }
 0x2aa   :  { %v595_v45 = vpop.f32.mrf.mxu1 }
 0x2ab   :  { %2042 = vmatmul.msk.f32.gmra.mxu2 %vm625_vm2, %v2939_v25  ;;  %2050 = vmatmul.msk.f32.gmra.mxu3 %vm625_vm2, %v595_v45 }
 0x2b2   :  { %v598_v47 = vpop.f32.mrf.mxu1 }
 0x2b3   :  { %2043 = vmatmul.msk.f32.gmra.mxu2 %vm625_vm2, %v2944_v27  ;;  %2051 = vmatmul.msk.f32.gmra.mxu3 %vm625_vm2, %v598_v47 }
 0x2ba   :  { %v601_v48 = vpop.f32.mrf.mxu1 }
 0x2bb   :  { %2044 = vmatmul.msk.f32.gmra.mxu2 %vm625_vm2, %v2949_v29  ;;  %2052 = vmatmul.msk.f32.gmra.mxu3 %vm625_vm2, %v601_v48  ;;  %v696_v29 = vpop.f32.mrf.mxu3 }
 0x2c2   :  { %v604_v50 = vpop.f32.mrf.mxu1 }
 0x2c3   :  { %2061 = vmatmul.msk.f32.vlgmr.msra.gmra.mxu2 %vm625_vm2, %v3058_v11  ;;  %2065 = vmatmul.msk.f32.vlgmr.msrb.gmra.mxu3 %vm625_vm2, %v2978_v40  ;;  %v699_v51 = vpop.f32.mrf.mxu3 }
 0x2c4   :  { %2073 = vmatmul.msk.f32.vlgmr.msra.gmra.mxu0 %vm625_vm2, %v604_v50 }
 0x2ca   :  { %v607_v25 = vpop.f32.mrf.mxu1 }
 0x2cb   :  { %2062 = vmatmul.msk.f32.gmra.mxu2 %vm625_vm2, %v3060_v12  ;;  %2066 = vmatmul.msk.f32.gmra.mxu3 %vm625_vm2, %v2984_v43  ;;  %v655_v43 = vpop.f32.mrf.mxu2  ;;  %v702_v53 = vpop.f32.mrf.mxu3 }
 0x2cc   :  { %2074 = vmatmul.msk.f32.gmra.mxu0 %vm625_vm2, %v607_v25  ;;  %v697_v36 = vadd.f32 %v696_v29, %v655_v43 }
 0x2d2   :  { %v610_v27 = vpop.f32.mrf.mxu1 }
 0x2d3   :  { %2063 = vmatmul.msk.f32.gmra.mxu2 %vm625_vm2, %v3062_v13  ;;  %2067 = vmatmul.msk.f32.gmra.mxu3 %vm625_vm2, %v2990_v46  ;;  %v658_v52 = vpop.f32.mrf.mxu2  ;;  %v705_v55 = vpop.f32.mrf.mxu3 }
 0x2d4   :  { %2075 = vmatmul.msk.f32.gmra.mxu0 %vm625_vm2, %v610_v27  ;;  %v700_v26 = vadd.f32 %v699_v51, %v658_v52 }
 0x2da   :  { %v613_v40 = vpop.f32.mrf.mxu1 }
 0x2db   :  { %2064 = vmatmul.msk.f32.gmra.mxu2 %vm625_vm2, %v3064_v14  ;;  %2068 = vmatmul.msk.f32.gmra.mxu3 %vm625_vm2, %v2996_v49  ;;  %v661_v54 = vpop.f32.mrf.mxu2  ;;  %v797_v46 = vpop.f32.mrf.mxu3 }
 0x2dc   :  { %2076 = vmatmul.msk.f32.gmra.mxu0 %vm625_vm2, %v613_v40  ;;  %v703_v20 = vadd.f32 %v702_v53, %v661_v54  ;;  %v2193_v54 = vld [vmem:[#allocation7] ss:$0 sm:$0xff] }
 0x2e3   :  { %v664_v56 = vpop.f32.mrf.mxu2  ;;  %v800_v58 = vpop.f32.mrf.mxu3 }
 0x2e4   :  { %v706_v28 = vadd.f32 %v705_v55, %v664_v56 }
 0x2eb   :  { %v803_v60 = vpop.f32.mrf.mxu3 }
 0x2f3   :  { %v806_v62 = vpop.f32.mrf.mxu3 }
 0x306   :  { %v742_v57 = vpop.f32.mrf.mxu2 }
 0x307   :  { %v754_v47 = vadd.f32 %v742_v57, %v697_v36  ;;  %v2102_v36 = vld [vmem:[%s3661_s6 + $0x88] sm:$0xff] }
 0x30e   :  { %v745_v59 = vpop.f32.mrf.mxu2 }
 0x30f   :  { %v755_v37 = vadd.f32 %v745_v59, %v700_v26  ;;  %v2095_v26 = vld [vmem:[%s3661_s6 + $0xd8] sm:$0xff] }
 0x316   :  { %v748_v61 = vpop.f32.mrf.mxu2 }
 0x317   :  { %v756_v31 = vadd.f32 %v748_v61, %v703_v20  ;;  %v1062_v61 = vld [vmem:[#allocation2] sm:$0xff]  ;;  %v2117_v20 = vld [vmem:[%s3661_s6 + $0xa8] sm:$0xff] }
 0x31e   :  { %v751_v63 = vpop.f32.mrf.mxu2 }
 0x31f   :  { %v757_v38 = vadd.f32 %v751_v63, %v706_v28  ;;  %v1064_v63 = vld [vmem:[#allocation2 + $0x10] sm:$0xff] }
 0x326   :  { %v838_v0 = vpop.f32.mrf.mxu2  ;;  %v884_v1 = vpop.f32.mrf.mxu3 }
 0x327   :  { %v839_v21 = vadd.f32 %v838_v0, %v797_v46  ;;  %v1065_v0 = vld [vmem:[#allocation2 + $0x18] sm:$0xff] }
 0x329   :  { %v896_v42 = vadd.f32 %v884_v1, %v839_v21  ;;  %v1066_v1 = vld [vmem:[#allocation2 + $0x20] sm:$0xff] }
 0x32a   :  { %v2116_v21 = vld [vmem:[%s3661_s6 + $0xa0] sm:$0xff] }
 0x32b   :  { %v1042_v51 = vadd.f32 %v896_v42, %v754_v47  ;;  %v2123_v42 = vld [vmem:[%s3661_s6 + $0x108] sm:$0xff]  ;;  %v2109_v47 = vld [vmem:[%s3661_s6 + $0xf0] sm:$0xff] }
 0x32e   :  { %v841_v49 = vpop.f32.mrf.mxu2  ;;  %v887_v2 = vpop.f32.mrf.mxu3 }
 0x32f   :  { %v842_v17 = vadd.f32 %v841_v49, %v800_v58  ;;  %v1067_v49 = vld [vmem:[#allocation2 + $0x28] sm:$0xff] }
 0x331   :  { %v897_v30 = vadd.f32 %v887_v2, %v842_v17  ;;  %v1068_v2 = vld [vmem:[#allocation2 + $0x30] sm:$0xff] }
 0x333   :  { %v1043_v48 = vadd.f32 %v897_v30, %v755_v37  ;;  %v2094_v30 = vld [vmem:[%s3661_s6 + $0xd0] sm:$0xff]  ;;  %v2101_v37 = vld [vmem:[%s3661_s6 + $0x80] sm:$0xff] }
 0x336   :  { %v844_v3 = vpop.f32.mrf.mxu2  ;;  %v890_v4 = vpop.f32.mrf.mxu3 }
 0x337   :  { %v845_v16 = vadd.f32 %v844_v3, %v803_v60  ;;  %v1069_v3 = vld [vmem:[#allocation2 + $0x38] sm:$0xff] }
 0x339   :  { %v898_v22 = vadd.f32 %v890_v4, %v845_v16  ;;  %v1070_v4 = vld [vmem:[#allocation2 + $0x40] sm:$0xff] }
 0x33a   :  { %v1142_v16 = vld [vmem:[%s3661_s6] sm:$0xff] }
 0x33b   :  { %v1044_v44 = vadd.f32 %v898_v22, %v756_v31  ;;  %v2093_v31 = vld [vmem:[%s3661_s6 + $0xc8] sm:$0xff] }
 0x33e   :  { %v847_v5 = vpop.f32.mrf.mxu2  ;;  %v893_v6 = vpop.f32.mrf.mxu3 }
 0x33f   :  { %v848_v18 = vadd.f32 %v847_v5, %v806_v62  ;;  %v1063_v62 = vld [vmem:[#allocation2 + $0x8] sm:$0xff]  ;;  %v2100_v5 = vld [vmem:[%s3661_s6 + $0x38] sm:$0xff] }
 0x340   :  { %1274 = vmatpush.msrb.mxu0 %v2100_v5 }
 0x341   :  { %v1026_v7 = vpop.f32.mrf.mxu0  ;;  %v899_v32 = vadd.f32 %v893_v6, %v848_v18  ;;  %v2099_v6 = vld [vmem:[%s3661_s6 + $0x30] sm:$0xff]  ;;  %v2119_v18 = vld [vmem:[%s3661_s6 + $0xb8] sm:$0xff] }
 0x342   :  { %1275 = vmatpush.msrb.mxu0 %v2099_v6 }
 0x343   :  { %v1045_v50 = vadd.f32 %v899_v32, %v757_v38  ;;  %v2092_v32 = vld [vmem:[%s3661_s6 + $0xc0] sm:$0xff] }
 0x346   :  { %v939_v8 = vpop.f32.mrf.mxu2  ;;  %v980_v9 = vpop.f32.mrf.mxu3 }
 0x347   :  { %v981_v33 = vadd.f32 %v980_v9, %v939_v8  ;;  %v2097_v8 = vld [vmem:[%s3661_s6 + $0x20] sm:$0xff]  ;;  %v2089_v9 = vld [vmem:[%s3661_s6 + $0x78] sm:$0xff] }
 0x348   :  { %1166 = vmatpush.msra.mxu3 %v2089_v9  ;;  %v1431_v9 = vld [vmem:[%s3617_s13 + $0x10] sm:$0xff] }
 0x349   :  { %v1029_v10 = vpop.f32.mrf.mxu0  ;;  %v1038_v25 = vadd.f32 %v1026_v7, %v981_v33  ;;  %v2098_v7 = vld [vmem:[%s3661_s6 + $0x28] sm:$0xff]  ;;  %v2104_v33 = vld [vmem:[%s3661_s6 + $0x98] sm:$0xff] }
 0x34a   :  { %1276 = vmatpush.msrb.mxu0 %v2098_v7  ;;  %v1404_v7 = vld [vmem:[%s3662_s24] sm:$0xff] }
 0x34b   :  { %v1046_v55 = vadd.f32 %v1042_v51, %v1038_v25  ;;  %v2115_v25 = vld [vmem:[%s3661_s6 + $0x58] sm:$0xff]  ;;  %v2113_v51 = vld [vmem:[%s3661_s6 + $0x48] sm:$0xff] }
 0x34c   :  { %1277 = vmatpush.msrb.mxu0 %v2097_v8  ;;  %v1432_v8 = vld [vmem:[%s3617_s13 + $0x18] sm:$0xff] }
 0x34d   :  { %v1054_v59 = vadd.f32 %v2193_v54, %v1046_v55 }
 0x34e   :  { %v942_v11 = vpop.f32.mrf.mxu2  ;;  %v983_v12 = vpop.f32.mrf.mxu3  ;;  %1336 = vmatpush.msra.mxu0 %v2119_v18  ;;  %v2140_v18 = vld [vmem:[%s3617_s13 + $0x48] sm:$0xff] }
 0x34f   :  { %v984_v24 = vadd.f32 %v983_v12, %v942_v11  ;;  %v1058_v57 = vmax.f32 %v1054_v59, 0.0  ;;  %v2087_v11 = vld [vmem:[%s3661_s6 + $0x68] sm:$0xff]  ;;  %v2086_v12 = vld [vmem:[%s3661_s6 + $0x60] sm:$0xff] }
 0x351   :  { %v1032_v13 = vpop.f32.mrf.mxu0  ;;  %v1039_v23 = vadd.f32 %v1029_v10, %v984_v24  ;;  %v2088_v10 = vld [vmem:[%s3661_s6 + $0x70] sm:$0xff] }
 0x352   :  { %1167 = vmatpush.msra.mxu3 %v2088_v10  ;;  %v1430_v10 = vld [vmem:[%s3617_s13 + $0x8] sm:$0xff] }
 0x353   :  { %v1047_v52 = vadd.f32 %v1043_v48, %v1039_v23  ;;  %v2110_v23 = vld [vmem:[%s3661_s6 + $0xf8] sm:$0xff]  ;;  %v2108_v48 = vld [vmem:[%s3661_s6 + $0xe8] sm:$0xff] }
 0x354   :  { %1168 = vmatpush.msra.mxu3 %v2087_v11  ;;  %v2130_v11 = vld [vmem:[%s3617_s13 + $0x70] sm:$0xff] }
 0x355   :  { %v1055_v46 = vadd.f32 %v2193_v54, %v1047_v52  ;;  %v2112_v52 = vld [vmem:[%s3661_s6 + $0x40] sm:$0xff] }
 0x356   :  { %v945_v14 = vpop.f32.mrf.mxu2  ;;  %v986_v15 = vpop.f32.mrf.mxu3  ;;  %1169 = vmatpush.msra.mxu3 %v2086_v12  ;;  %v1429_v12 = vld [vmem:[%s3617_s13] sm:$0xff] }
 0x357   :  { %v987_v19 = vadd.f32 %v986_v15, %v945_v14  ;;  %v1059_v60 = vmax.f32 %v1055_v46, 0.0  ;;  %v1144_v14 = vld [vmem:[%s3661_s6 + $0x10] sm:$0xff]  ;;  %v1143_v15 = vld [vmem:[%s3661_s6 + $0x8] sm:$0xff] }
 0x359   :  { %v1040_v34 = vadd.f32 %v1032_v13, %v987_v19  ;;  %v1035_v35 = vpop.f32.mrf.mxu0  ;;  %v1145_v13 = vld [vmem:[%s3661_s6 + $0x18] sm:$0xff]  ;;  %v2118_v19 = vld [vmem:[%s3661_s6 + $0xb0] sm:$0xff] }
 0x35a   :  { %1189 = vmatpush.msrb.mxu3 %v1145_v13  ;;  %1337 = vmatpush.msra.mxu0 %v2118_v19  ;;  %v2129_v13 = vld [vmem:[%s3617_s13 + $0x68] sm:$0xff]  ;;  %v2136_v19 = vld [vmem:[%s3617_s13 + $0x30] sm:$0xff] }
 0x35b   :  { %v1048_v27 = vadd.f32 %v1044_v44, %v1040_v34  ;;  %v2122_v44 = vld [vmem:[%s3661_s6 + $0x100] sm:$0xff] }
 0x35c   :  { %1190 = vmatpush.msrb.mxu3 %v1144_v14  ;;  %1338 = vmatpush.msra.mxu0 %v2117_v20  ;;  %v2142_v14 = vld [vmem:[%s3617_s13 + $0x58] sm:$0xff]  ;;  %v2139_v20 = vld [vmem:[%s3617_s13 + $0x40] sm:$0xff] }
 0x35d   :  { %v1056_v43 = vadd.f32 %v2193_v54, %v1048_v27 }
 0x35e   :  { %v948_v39 = vpop.f32.mrf.mxu2  ;;  %v989_v41 = vpop.f32.mrf.mxu3  ;;  %1191 = vmatpush.msrb.mxu3 %v1143_v15  ;;  %1339 = vmatpush.msra.mxu0 %v2116_v21  ;;  %v2128_v15 = vld [vmem:[%s3617_s13 + $0x60] sm:$0xff]  ;;  %v2135_v21 = vld [vmem:[%s3617_s13 + $0x28] sm:$0xff] }
 0x35f   :  { %v990_v45 = vadd.f32 %v989_v41, %v948_v39  ;;  %v1060_v58 = vmax.f32 %v1056_v43, 0.0  ;;  %v2125_v39 = vld [vmem:[%s3661_s6 + $0x118] sm:$0xff]  ;;  %v2124_v41 = vld [vmem:[%s3661_s6 + $0x110] sm:$0xff] }
 0x360   :  { %1192 = vmatpush.msrb.mxu3 %v1142_v16  ;;  %v2131_v43 = vld [vmem:[%s3617_s13 + $0x78] sm:$0xff]  ;;  %v2141_v16 = vld [vmem:[%s3617_s13 + $0x50] sm:$0xff] }
 0x361   :  { %v1041_v40 = vadd.f32 %v1035_v35, %v990_v45  ;;  %v2103_v35 = vld [vmem:[%s3661_s6 + $0x90] sm:$0xff] }
 0x363   :  { %v1049_v53 = vadd.f32 %v1045_v50, %v1041_v40  ;;  %v2107_v50 = vld [vmem:[%s3661_s6 + $0xe0] sm:$0xff]  ;;  %v2114_v40 = vld [vmem:[%s3661_s6 + $0x50] sm:$0xff] }
 0x365   :  { %v1057_v29 = vadd.f32 %v2193_v54, %v1049_v53 }
 0x367   :  { %v1061_v56 = vmax.f32 %v1057_v29, 0.0 }
 0x369   :  { %1110 = vmatpush.msrb.mxu2 %v1061_v56 }
 0x36b   :  { %1111 = vmatpush.msrb.mxu2 %v1060_v58 }
 0x36d   :  { %1112 = vmatpush.msrb.mxu2 %v1059_v60 }
 0x36f   :  { %1113 = vmatpush.msrb.mxu2 %v1058_v57 }
 0x370   :  { %2077 = vmatmul.msk.f32.vlgmr.msrb.gmra.mxu2 %vm625_vm2, %v1062_v61 }
 0x378   :  { %2078 = vmatmul.msk.f32.gmra.mxu2 %vm625_vm2, %v1063_v62 }
 0x380   :  { %2079 = vmatmul.msk.f32.gmra.mxu2 %vm625_vm2, %v1064_v63 }
 0x388   :  { %2080 = vmatmul.msk.f32.gmra.mxu2 %vm625_vm2, %v1065_v0 }
 0x390   :  { %2081 = vmatmul.msk.f32.gmra.mxu2 %vm625_vm2, %v1066_v1 }
 0x398   :  { %2082 = vmatmul.msk.f32.gmra.mxu2 %vm625_vm2, %v1067_v49 }
 0x3a0   :  { %2083 = vmatmul.msk.f32.gmra.mxu2 %vm625_vm2, %v1068_v2 }
 0x3a8   :  { %2084 = vmatmul.msk.f32.gmra.mxu2 %vm625_vm2, %v1069_v3  ;;  %v2194_v3 = vld [vmem:[#allocation9] ss:$0 sm:$0xff] }
 0x3b0   :  { %2085 = vmatmul.msk.f32.gmra.mxu2 %vm625_vm2, %v1070_v4 }
 0x3f3   :  { %v1115_v17 = vpop.f32.mrf.mxu2 }
 0x3fb   :  { %v1118_v22 = vpop.f32.mrf.mxu2 }
 0x3fc   :  { %2106 = vmatmul.msk.f32.vlgmr.msrb.gmra.mxu0 %vm625_vm2, %v1118_v22  ;;  %v2134_v22 = vld [vmem:[%s3617_s13 + $0x20] sm:$0xff] }
 0x3fd   :  { %1387 = vmatpush.msrb.mxu0 %v2125_v39  ;;  %v1602_v39 = vld [vmem:[%s3622_s18 + $0x68] sm:$0xff] }
 0x3ff   :  { %1388 = vmatpush.msrb.mxu0 %v2124_v41  ;;  %v1600_v41 = vld [vmem:[%s3622_s18 + $0x58] sm:$0xff] }
 0x401   :  { %1389 = vmatpush.msrb.mxu0 %v2123_v42  ;;  %v1597_v42 = vld [vmem:[%s3622_s18 + $0x40] sm:$0xff] }
 0x403   :  { %v1121_v24 = vpop.f32.mrf.mxu2  ;;  %1390 = vmatpush.msrb.mxu0 %v2122_v44  ;;  %v1586_v44 = vld [vmem:[#allocation15 + $0x30] sm:$0xff] }
 0x40b   :  { %v1124_v28 = vpop.f32.mrf.mxu2 }
 0x40c   :  { %2090 = vmatmul.msk.f32.vlgmr.msra.gmra.mxu3 %vm625_vm2, %v1124_v28 }
 0x40d   :  { %1217 = vmatpush.msra.mxu3 %v2095_v26 }
 0x40f   :  { %1218 = vmatpush.msra.mxu3 %v2094_v30 }
 0x411   :  { %1219 = vmatpush.msra.mxu3 %v2093_v31  ;;  %v1551_v31 = vld [vmem:[#allocation12 + $0x18] sm:$0xff] }
 0x413   :  { %v1127_v34 = vpop.f32.mrf.mxu2  ;;  %1220 = vmatpush.msra.mxu3 %v2092_v32  ;;  %v1550_v32 = vld [vmem:[#allocation12 + $0x10] sm:$0xff] }
 0x414   :  { %2091 = vmatmul.msk.f32.vlgmr.msrb.gmra.mxu3 %vm625_vm2, %v1115_v17  ;;  %v2137_v17 = vld [vmem:[%s3617_s13 + $0x38] sm:$0xff] }
 0x415   :  { %1251 = vmatpush.msrb.mxu3 %v2104_v33  ;;  %v1549_v33 = vld [vmem:[#allocation12 + $0x8] sm:$0xff] }
 0x417   :  { %1252 = vmatpush.msrb.mxu3 %v2103_v35  ;;  %v1603_v35 = vld [vmem:[%s3622_s18 + $0x70] sm:$0xff] }
 0x418   :  { %1617 = vmatpush.msra.mxu2 %v1603_v35 }
 0x419   :  { %1253 = vmatpush.msrb.mxu3 %v2102_v36  ;;  %v1601_v36 = vld [vmem:[%s3622_s18 + $0x60] sm:$0xff] }
 0x41a   :  { %1618 = vmatpush.msra.mxu2 %v1601_v36 }
 0x41b   :  { %v1130_v38 = vpop.f32.mrf.mxu2  ;;  %1254 = vmatpush.msrb.mxu3 %v2101_v37  ;;  %v1604_v37 = vld [vmem:[%s3622_s18 + $0x78] sm:$0xff] }
 0x41c   :  { %2120 = vmatmul.msk.f32.vlgmr.msra.gmra.mxu0 %vm625_vm2, %v1130_v38  ;;  %v1599_v38 = vld [vmem:[%s3622_s18 + $0x50] sm:$0xff] }
 0x41d   :  { %1454 = vmatpush.msra.mxu0 %v2131_v43  ;;  %1619 = vmatpush.msra.mxu2 %v1599_v38 }
 0x41f   :  { %1455 = vmatpush.msra.mxu0 %v2130_v11  ;;  %1620 = vmatpush.msra.mxu2 %v1597_v42  ;;  %v1759_v42 = vld [vmem:[#allocation18 + $0x30] sm:$0xff] }
 0x421   :  { %1456 = vmatpush.msra.mxu0 %v2129_v13 }
 0x423   :  { %v1133_v45 = vpop.f32.mrf.mxu2  ;;  %1457 = vmatpush.msra.mxu0 %v2128_v15 }
 0x424   :  { %2096 = vmatmul.msk.f32.vlgmr.msra.gmra.mxu3 %vm625_vm2, %v1133_v45  ;;  %v1595_v45 = vld [vmem:[%s3622_s18 + $0x30] sm:$0xff] }
 0x425   :  { %1302 = vmatpush.msra.mxu3 %v2110_v23  ;;  %v1598_v23 = vld [vmem:[%s3622_s18 + $0x48] sm:$0xff]  ;;  %1621 = vmatpush.msra.mxu2 %v1595_v45  ;;  %v1756_v45 = vld [vmem:[#allocation18 + $0x18] sm:$0xff] }
 0x427   :  { %1303 = vmatpush.msra.mxu3 %v2109_v47  ;;  %v1593_v47 = vld [vmem:[%s3622_s18 + $0x20] sm:$0xff] }
 0x428   :  { %1622 = vmatpush.msra.mxu2 %v1593_v47 }
 0x429   :  { %1304 = vmatpush.msra.mxu3 %v2108_v48  ;;  %v1591_v48 = vld [vmem:[%s3622_s18 + $0x10] sm:$0xff] }
 0x42a   :  { %1623 = vmatpush.msra.mxu2 %v1591_v48  ;;  %v1755_v48 = vld [vmem:[#allocation18 + $0x10] sm:$0xff] }
 0x42b   :  { %v1136_v27 = vpop.f32.mrf.mxu2  ;;  %1305 = vmatpush.msra.mxu3 %v2107_v50  ;;  %v1589_v50 = vld [vmem:[%s3622_s18] sm:$0xff] }
 0x42c   :  { %2105 = vmatmul.msk.f32.vlgmr.msrb.gmra.mxu3 %vm625_vm2, %v1127_v34  ;;  %v1548_v34 = vld [vmem:[#allocation12] sm:$0xff]  ;;  %1624 = vmatpush.msra.mxu2 %v1589_v50 }
 0x42d   :  { %1359 = vmatpush.msrb.mxu3 %v2115_v25 }
 0x42f   :  { %1360 = vmatpush.msrb.mxu3 %v2114_v40 }
 0x431   :  { %1361 = vmatpush.msrb.mxu3 %v2113_v51 }
 0x433   :  { %1362 = vmatpush.msrb.mxu3 %v2112_v52  ;;  %v1139_v53 = vpop.f32.mrf.mxu2 }
 0x434   :  { %2111 = vmatmul.msk.f32.vlgmr.msra.gmra.mxu3 %vm625_vm2, %v1136_v27  ;;  %2126 = vmatmul.msk.f32.vlgmr.msrb.gmra.mxu0 %vm625_vm2, %v1139_v53  ;;  %v1588_v27 = vld [vmem:[%s3663_s14] sm:$0x3] }
 0x435   :  { %1504 = vmatpush.msrb.mxu0 %v2137_v17  ;;  %2145 = vmatmul.msk.f32.vlgmr.msra.gmra.mxu2 %vm1605_vm4, %v1588_v27 }
 0x437   :  { %1505 = vmatpush.msrb.mxu0 %v2136_v19 }
 0x439   :  { %1506 = vmatpush.msrb.mxu0 %v2135_v21 }
 0x43b   :  { %1507 = vmatpush.msrb.mxu0 %v2134_v22 }
 0x43c   :  { %2121 = vmatmul.msk.f32.vlgmr.msrb.gmra.mxu3 %vm625_vm2, %v1121_v24 }
 0x479   :  { %v1279_v56 = vpop.f32.mrf.mxu0 }
 0x48f   :  { %v1171_v54 = vpop.f32.mrf.mxu3 }
 0x497   :  { %v1194_v55 = vpop.f32.mrf.mxu3 }
 0x498   :  { %v1195_v57 = vadd.f32 %v1194_v55, %v1171_v54  ;;  %v2195_v54 = vld [vmem:[#allocation10] ss:$0 sm:$0xff] }
 0x499   :  { %v1341_v58 = vpop.f32.mrf.mxu0 }
 0x4a7   :  { %v1222_v29 = vpop.f32.mrf.mxu3 }
 0x4a8   :  { %v1225_v0 = vadd.f32 %v1222_v29, %v1195_v57  ;;  %v1585_v57 = vld [vmem:[#allocation15 + $0x28] sm:$0xff] }
 0x4af   :  { %v1256_v46 = vpop.f32.mrf.mxu3 }
 0x4b0   :  { %v1280_v60 = vadd.f32 %v1279_v56, %v1256_v46  ;;  %v1596_v46 = vld [vmem:[%s3622_s18 + $0x38] sm:$0xff] }
 0x4b1   :  { %v1392_v63 = vpop.f32.mrf.mxu0 }
 0x4b7   :  { %v1307_v59 = vpop.f32.mrf.mxu3 }
 0x4b8   :  { %v1310_v61 = vadd.f32 %v1307_v59, %v1280_v60  ;;  %v1584_v59 = vld [vmem:[#allocation15 + $0x20] sm:$0xff] }
 0x4b9   :  { %v1594_v60 = vld [vmem:[%s3622_s18 + $0x28] sm:$0xff] }
 0x4ba   :  { %v1396_v49 = vadd.f32 %v1310_v61, %v1225_v0  ;;  %v1582_v61 = vld [vmem:[#allocation15 + $0x10] sm:$0xff]  ;;  %v1580_v0 = vld [vmem:[#allocation15] sm:$0xff] }
 0x4bf   :  { %v1364_v62 = vpop.f32.mrf.mxu3 }
 0x4c0   :  { %v1365_v1 = vadd.f32 %v1364_v62, %v1341_v58  ;;  %v1587_v58 = vld [vmem:[#allocation15 + $0x38] sm:$0xff] }
 0x4c1   :  { %1684 = vmatpush.msrb.mxu2 %v1587_v58  ;;  %v1592_v62 = vld [vmem:[%s3622_s18 + $0x18] sm:$0xff] }
 0x4c2   :  { %v1395_v2 = vadd.f32 %v1392_v63, %v1365_v1  ;;  %v1583_v63 = vld [vmem:[#allocation15 + $0x18] sm:$0xff]  ;;  %v1590_v1 = vld [vmem:[%s3622_s18 + $0x8] sm:$0xff] }
 0x4c3   :  { %1685 = vmatpush.msrb.mxu2 %v1585_v57 }
 0x4c4   :  { %v1397_v4 = vadd.f32 %v1396_v49, %v1395_v2  ;;  %v1581_v49 = vld [vmem:[#allocation15 + $0x8] sm:$0xff]  ;;  %v1739_v2 = vld [vmem:[%s3664_s0] sm:$0x3] }
 0x4c5   :  { %1686 = vmatpush.msrb.mxu2 %v1583_v63  ;;  %1741 = vrot.lane.b32.xlu0 %v1739_v2, %s2606_s19  ;;  %v1852_v63 = vld [vmem:[%s3627_s23 + $0xf0] sm:$0xff] }
 0x4c6   :  { %v1402_v5 = vadd.f32 %v2194_v3, %v1397_v4  ;;  %v2196_v3 = vld [vmem:[#allocation13] ss:$0 sm:$0xff]  ;;  %v1848_v2 = vld [vmem:[%s3627_s23 + $0xd0] sm:$0xff] }
 0x4c7   :  { %1687 = vmatpush.msrb.mxu2 %v1581_v49  ;;  %v1851_v49 = vld [vmem:[%s3627_s23 + $0xe8] sm:$0xff] }
 0x4c8   :  { %v1403_v6 = vmax.f32 %v1402_v5, 0.0 }
 0x4ca   :  { %1424 = vmatpush.msra.mxu3 %v1403_v6 }
 0x4cb   :  { %2127 = vmatmul.msk.f32.vlgmr.msra.gmra.mxu3 %vm1405_vm3, %v1404_v7  ;;  %v1692_v7 = vld [vmem:[#allocation16] sm:$0x3] }
 0x4cc   :  { %1476 = vmatpush.msrb.mxu3 %v1432_v8  ;;  %v1694_v8 = vperm.slane %v1692_v7, 0  ;;  %v1695_v19 = vperm.slane %v1692_v7, 1  ;;  %v1845_v7 = vld [vmem:[%s3627_s23 + $0xb8] sm:$0xff] }
 0x4ce   :  { %1477 = vmatpush.msrb.mxu3 %v1431_v9  ;;  %v1626_v9 = vpop.f32.mrf.mxu2 }
 0x4d0   :  { %1478 = vmatpush.msrb.mxu3 %v1430_v10 }
 0x4d2   :  { %1479 = vmatpush.msrb.mxu3 %v1429_v12 }
 0x4d4   :  { %1532 = vmatpush.msra.mxu3 %v2142_v14 }
 0x4d6   :  { %1533 = vmatpush.msra.mxu3 %v2141_v16 }
 0x4d8   :  { %1534 = vmatpush.msra.mxu3 %v2140_v18 }
 0x4da   :  { %1535 = vmatpush.msra.mxu3 %v2139_v20 }
 0x54e   :  { %v1426_v24 = vpop.f32.mrf.mxu3 }
 0x54f   :  { %v1439_v26 = vrot.slane %v1426_v24, 6  ;;  %2133 = vmatmul.msk.f32.vlgmr.msrb.gmra.mxu3 %vm625_vm2, %v1426_v24  ;;  %v1517_v28 = vrot.slane %v1426_v24, 4  ;;  %v1489_v30 = vrot.slane %v1426_v24, 2 }
 0x550   :  { %1637 = vmatpush.msrb.mxu3 %v1604_v37 }
 0x551   :  { %2132 = vmatmul.msk.f32.vlgmr.msra.gmra.mxu0 %vm625_vm2, %v1439_v26 }
 0x552   :  { %1571 = vmatpush.msra.mxu0 %v1551_v31  ;;  %1638 = vmatpush.msrb.mxu3 %v1602_v39 }
 0x554   :  { %1572 = vmatpush.msra.mxu0 %v1550_v32  ;;  %1639 = vmatpush.msrb.mxu3 %v1600_v41  ;;  %v1760_v41 = vld [vmem:[#allocation18 + $0x38] sm:$0xff] }
 0x555   :  { %1804 = vmatpush.msra.mxu2 %v1760_v41  ;;  %v1915_v41 = vld [vmem:[%s3629_s25 + $0x68] sm:$0xff] }
 0x556   :  { %1573 = vmatpush.msra.mxu0 %v1549_v33  ;;  %1640 = vmatpush.msrb.mxu3 %v1598_v23  ;;  %v1757_v23 = vld [vmem:[#allocation18 + $0x20] sm:$0xff] }
 0x557   :  { %2143 = vmatmul.msk.f32.vlgmr.msra.gmra.mxu3 %vm625_vm2, %v1517_v28  ;;  %1805 = vmatpush.msra.mxu2 %v1759_v42  ;;  %v1930_v42 = vld [vmem:[%s3629_s25 + $0xe0] sm:$0xff] }
 0x558   :  { %1574 = vmatpush.msra.mxu0 %v1548_v34  ;;  %1641 = vmatpush.msrb.mxu3 %v1596_v46 }
 0x559   :  { %2138 = vmatmul.msk.f32.vlgmr.msrb.gmra.mxu0 %vm625_vm2, %v1489_v30 }
 0x55a   :  { %1664 = vmatpush.msrb.mxu0 %v1586_v44  ;;  %1642 = vmatpush.msrb.mxu3 %v1594_v60  ;;  %v1758_v44 = vld [vmem:[#allocation18 + $0x28] sm:$0xff] }
 0x55b   :  { %1806 = vmatpush.msra.mxu2 %v1758_v44  ;;  %v1914_v44 = vld [vmem:[%s3629_s25 + $0x60] sm:$0xff] }
 0x55c   :  { %1665 = vmatpush.msrb.mxu0 %v1584_v59  ;;  %1643 = vmatpush.msrb.mxu3 %v1592_v62  ;;  %v1761_v62 = vld [vmem:[%s3665_s28] sm:$0x3] }
 0x55d   :  { %1807 = vmatpush.msra.mxu2 %v1757_v23  ;;  %v1929_v23 = vld [vmem:[%s3629_s25 + $0xd8] sm:$0xff] }
 0x55e   :  { %1666 = vmatpush.msrb.mxu0 %v1582_v61  ;;  %1644 = vmatpush.msrb.mxu3 %v1590_v1  ;;  %v1762_v61 = vld [vmem:[#allocation19] sm:$0x3f] }
 0x55f   :  { %2146 = vmatmul.msk.f32.vlgmr.msrb.gmra.mxu3 %vm1605_vm4, %v1588_v27  ;;  %1808 = vmatpush.msra.mxu2 %v1756_v45  ;;  %v1742_v27 = vpop.permute.xlu0 %1741  ;;  %v1850_v1 = vld [vmem:[%s3627_s23 + $0xe0] sm:$0xff]  ;;  %v1913_v45 = vld [vmem:[%s3629_s25 + $0x58] sm:$0xff] }
 0x560   :  { %1667 = vmatpush.msrb.mxu0 %v1580_v0  ;;  %v1853_v0 = vld [vmem:[%s3627_s23 + $0xf8] sm:$0xff]  ;;  %1860 = vmatpush.msra.mxu3 %v1852_v63  ;;  %v1906_v63 = vld [vmem:[%s3629_s25 + $0x20] sm:$0xff] }
 0x561   :  { %1809 = vmatpush.msra.mxu2 %v1755_v48  ;;  %v1912_v48 = vld [vmem:[%s3629_s25 + $0x50] sm:$0xff] }
 0x562   :  { %1861 = vmatpush.msra.mxu3 %v1850_v1  ;;  %v1905_v1 = vld [vmem:[%s3629_s25 + $0x18] sm:$0xff] }
 0x564   :  { %1862 = vmatpush.msra.mxu3 %v1848_v2  ;;  %v1904_v2 = vld [vmem:[%s3629_s25 + $0x10] sm:$0xff] }
 0x5ce   :  { %v1459_v25 = vpop.f32.mrf.mxu0 }
 0x5d2   :  { %v1481_v40 = vpop.f32.mrf.mxu3 }
 0x5d3   :  { %v1482_v52 = vadd.f32 %v1481_v40, %v1459_v25  ;;  %v1754_v25 = vld [vmem:[#allocation18 + $0x8] sm:$0xff]  ;;  %v1753_v40 = vld [vmem:[#allocation18] sm:$0xff] }
 0x5d4   :  { %1810 = vmatpush.msra.mxu2 %v1754_v25  ;;  %v1911_v25 = vld [vmem:[%s3629_s25 + $0x48] sm:$0xff] }
 0x5d6   :  { %v1509_v51 = vpop.f32.mrf.mxu0  ;;  %1811 = vmatpush.msra.mxu2 %v1753_v40  ;;  %v1910_v40 = vld [vmem:[%s3629_s25 + $0x40] sm:$0xff] }
 0x5d7   :  { %v1540_v53 = vadd.f32 %v1509_v51, %v1482_v52 }
 0x5da   :  { %v1537_v55 = vpop.f32.mrf.mxu3 }
 0x5db   :  { %v1541_v29 = vadd.f32 %v1540_v53, %v1537_v55 }
 0x5dd   :  { %v1546_v43 = vadd.f32 %v2195_v54, %v1541_v29 }
 0x5df   :  { %v1547_v56 = vmax.f32 %v1546_v43, 0.0 }
 0x5e1   :  { %2144 = vmatmul.msk.f32.vlgmr.msra.gmra.mxu0 %vm625_vm2, %v1547_v56 }
 0x5e2   :  { %v1646_v16 = vpop.f32.mrf.mxu3  ;;  %2151 = vmatpush.msk.msra.mxu0 %vm1767_vm13, %v1762_v61  ;;  %v1907_v61 = vld [vmem:[%s3629_s25 + $0x28] sm:$0xff] }
 0x65e   :  { %v1576_v4 = vpop.f32.mrf.mxu0 }
 0x65f   :  { %v1577_v5 = vadd.f32 %v2196_v3, %v1576_v4  ;;  %v1849_v3 = vld [vmem:[%s3627_s23 + $0xd8] sm:$0xff]  ;;  %v1846_v4 = vld [vmem:[%s3627_s23 + $0xc0] sm:$0xff] }
 0x660   :  { %1863 = vmatpush.msra.mxu3 %v1846_v4  ;;  %v1902_v4 = vld [vmem:[%s3629_s25] sm:$0xff] }
 0x661   :  { %v1579_v6 = vmax.f32 %v1577_v5, 0.0  ;;  %v1847_v5 = vld [vmem:[%s3627_s23 + $0xc8] sm:$0xff] }
 0x663   :  { %2147 = vmatmul.msk.f32.vlgmr.msrb.gmra.mxu0 %vm625_vm2, %v1579_v6  ;;  %2148 = vmatmul.msk.f32.vlgmr.msrb.gmra.mxu2 %vm625_vm2, %v1579_v6  ;;  %v1844_v6 = vld [vmem:[%s3627_s23 + $0xb0] sm:$0xff] }
 0x664   :  { %1880 = vmatpush.msrb.mxu0 %v1853_v0  ;;  %1864 = vmatpush.msra.mxu3 %v1844_v6  ;;  %v1919_v0 = vld [vmem:[%s3629_s25 + $0x88] sm:$0xff] }
 0x666   :  { %1881 = vmatpush.msrb.mxu0 %v1851_v49  ;;  %v1918_v49 = vld [vmem:[%s3629_s25 + $0x80] sm:$0xff] }
 0x668   :  { %1882 = vmatpush.msrb.mxu0 %v1849_v3  ;;  %v1903_v3 = vld [vmem:[%s3629_s25 + $0x8] sm:$0xff] }
 0x66a   :  { %1883 = vmatpush.msrb.mxu0 %v1847_v5  ;;  %v1854_v5 = vld [vmem:[#allocation22] sm:$0x3] }
 0x66b   :  { %2152 = vmatmul.msk.f32.vlgmr.msra.gmra.mxu0 %vm1763_vm14, %v1761_v62  ;;  %v1920_v62 = vld [vmem:[%s3629_s25 + $0x90] sm:$0xff]  ;;  %v1857_v6 = vperm.slane %v1854_v5, 1 }
 0x66c   :  { %1884 = vmatpush.msrb.mxu0 %v1845_v7 }
 0x6e0   :  { %v1669_v10 = vpop.f32.mrf.mxu0 }
 0x6e1   :  { %v1670_v11 = vadd.f32 %v1669_v10, %v1626_v9  ;;  %v1843_v9 = vld [vmem:[%s3627_s23 + $0xa8] sm:$0xff]  ;;  %v1840_v10 = vld [vmem:[%s3627_s23 + $0x90] sm:$0xff] }
 0x6e2   :  { %1885 = vmatpush.msrb.mxu0 %v1843_v9 }
 0x6e3   :  { %v1698_v12 = vadd.f32 %v1694_v8, %v1670_v11  ;;  %v1842_v8 = vld [vmem:[%s3627_s23 + $0xa0] sm:$0xff]  ;;  %v1841_v11 = vld [vmem:[%s3627_s23 + $0x98] sm:$0xff] }
 0x6e4   :  { %1865 = vmatpush.msra.mxu3 %v1842_v8  ;;  %1886 = vmatpush.msrb.mxu0 %v1841_v11 }
 0x6e5   :  { %v2149_v13 = vmul.f32 -1.442695, %v1698_v12  ;;  %v1838_v12 = vld [vmem:[%s3627_s23 + $0x80] sm:$0xff] }
 0x6e6   :  { %v1689_v17 = vpop.f32.mrf.mxu2  ;;  %1866 = vmatpush.msra.mxu3 %v1840_v10  ;;  %v1856_v10 = vperm.slane %v1854_v5, 0 }
 0x6e7   :  { %2199 = vpow2.f32 %v2149_v13  ;;  %v1690_v18 = vadd.f32 %v1689_v17, %v1646_v16  ;;  %v1839_v13 = vld [vmem:[%s3627_s23 + $0x88] sm:$0xff]  ;;  %v1834_v16 = vld [vmem:[%s3627_s23 + $0x60] sm:$0xff] }
 0x6e8   :  { %1867 = vmatpush.msra.mxu3 %v1838_v12  ;;  %1887 = vmatpush.msrb.mxu0 %v1839_v13  ;;  %v1835_v17 = vld [vmem:[%s3627_s23 + $0x68] sm:$0xff] }
 0x6e9   :  { %v1699_v21 = vadd.f32 %v1695_v19, %v1690_v18  ;;  %v1832_v18 = vld [vmem:[%s3627_s23 + $0x50] sm:$0xff]  ;;  %v1833_v19 = vld [vmem:[%s3627_s23 + $0x58] sm:$0xff] }
 0x6eb   :  { %v2150_v37 = vmul.f32 -1.442695, %v1699_v21 }
 0x6ed   :  { %v2200_v14 = vpop.eup %2199 }
 0x6ee   :  { %v1703_v15 = vadd.f32 1.0, %v2200_v14  ;;  %v1836_v14 = vld [vmem:[%s3627_s23 + $0x70] sm:$0xff] }
 0x6ef   :  { %1868 = vmatpush.msra.mxu3 %v1836_v14  ;;  %v2198_v14 = vld [vmem:[#allocation24] ss:$0 sm:$0xff] }
 0x6f0   :  { %2201 = vrcp.f32 %v1703_v15  ;;  %v1715_v26 = vand.u32 2147483648, %v1703_v15  ;;  %v1713_v30 = vand.u32 2147483647, %v1703_v15  ;;  %vm1709_vm6 = vweird.f32 %v1703_v15 }
 0x6f1   :  { %2203 = vtanh.f32 %v1699_v21  ;;  %1869 = vmatpush.msra.mxu3 %v1834_v16  ;;  %v1831_v21 = vld [vmem:[%s3627_s23 + $0x48] sm:$0xff] }
 0x6f2   :  { %v1716_v32 = vor.u32 1.1754944e-38, %v1715_v26  ;;  %vm1714_vm8 = vcmp.eq.f32.partialorder %v1713_v30, 8.507059e+37  ;;  %2205 = vpow2.f32 %v2150_v37  ;;  %v1829_v26 = vld [vmem:[%s3627_s23 + $0x38] sm:$0xff]  ;;  %v1827_v30 = vld [vmem:[%s3627_s23 + $0x28] sm:$0xff] }
 0x6f3   :  { %1870 = vmatpush.msra.mxu3 %v1832_v18  ;;  %v1917_v37 = vld [vmem:[%s3629_s25 + $0x78] sm:$0xff] }
 0x6f4   :  { %1938 = vmatpush.msrb.mxu2 %v1917_v37 }
 0x6f6   :  { %v2202_v20 = vpop.eup %2201 }
 0x6f7   :  { %v1705_v22 = vmul.f32 %v2202_v20, %v1703_v15  ;;  %vm1710_vm5 = vweird.f32 %v2202_v20  ;;  %v2204_v34 = vpop.eup %2203  ;;  %v1837_v15 = vld [vmem:[%s3627_s23 + $0x78] sm:$0xff] }
 0x6f8   :  { %vm1711_vm7 = vmor %vm1709_vm6, %vm1710_vm5  ;;  %v2206_v38 = vpop.eup %2205  ;;  %1888 = vmatpush.msrb.mxu0 %v1837_v15 }
 0x6f9   :  { %v1706_v24 = vsub.f32 1.0, %v1705_v22  ;;  %v1723_v39 = vadd.f32 1.0, %v2206_v38  ;;  %v1916_v38 = vld [vmem:[%s3629_s25 + $0x70] sm:$0xff] }
 0x6fa   :  { %1889 = vmatpush.msrb.mxu0 %v1835_v17  ;;  %1939 = vmatpush.msrb.mxu2 %v1916_v38 }
 0x6fb   :  { %v1707_v28 = vmul.f32 %v2202_v20, %v1706_v24  ;;  %2207 = vrcp.f32 %v1723_v39  ;;  %v1735_v43 = vand.u32 2147483648, %v1723_v39  ;;  %vm1729_vm10 = vweird.f32 %v1723_v39  ;;  %v1828_v24 = vld [vmem:[%s3627_s23 + $0x30] sm:$0xff] }
 0x6fc   :  { %v1733_v56 = vand.u32 2147483647, %v1723_v39  ;;  %1890 = vmatpush.msrb.mxu0 %v1833_v19  ;;  %1940 = vmatpush.msrb.mxu2 %v1915_v41 }
 0x6fd   :  { %v1708_v31 = vadd.f32 %v2202_v20, %v1707_v28  ;;  %v1736_v58 = vor.u32 1.1754944e-38, %v1735_v43  ;;  %v1826_v28 = vld [vmem:[%s3627_s23 + $0x20] sm:$0xff]  ;;  %v1921_v43 = vld [vmem:[%s3629_s25 + $0x98] sm:$0xff] }
 0x6fe   :  { %vm1734_vm12 = vcmp.eq.f32.partialorder %v1733_v56, 8.507059e+37  ;;  %1891 = vmatpush.msrb.mxu0 %v1831_v21  ;;  %1941 = vmatpush.msrb.mxu2 %v1914_v44  ;;  %v1788_v56 = vpop.f32.mrf.mxu0 }
 0x6ff   :  { %v1712_v33 = vsel %vm1711_vm7, %v2202_v20, %v1708_v31  ;;  %v1830_v20 = vld [vmem:[%s3627_s23 + $0x40] sm:$0xff]  ;;  %v1824_v31 = vld [vmem:[%s3627_s23 + $0x10] sm:$0xff] }
 0x700   :  { %v1717_v35 = vsel %vm1714_vm8, %v1716_v32, %v1712_v33  ;;  %1871 = vmatpush.msra.mxu3 %v1830_v20  ;;  %1892 = vmatpush.msrb.mxu0 %v1829_v26  ;;  %v1825_v32 = vld [vmem:[%s3627_s23 + $0x18] sm:$0xff]  ;;  %v1822_v33 = vld [vmem:[%s3627_s23] sm:$0xff] }
 0x701   :  { %v1745_v36 = vmul.f32 %v2204_v34, %v1717_v35  ;;  %v2208_v47 = vpop.eup %2207  ;;  %v1744_v53 = vmul.f32 %v1742_v27, %v1717_v35  ;;  %v1823_v34 = vld [vmem:[%s3627_s23 + $0x8] sm:$0xff]  ;;  %v1933_v35 = vld [vmem:[%s3629_s25 + $0xf8] sm:$0xff]  ;;  %1942 = vmatpush.msrb.mxu2 %v1913_v45  ;;  %v1926_v27 = vld [vmem:[%s3629_s25 + $0xc0] sm:$0xff] }
 0x702   :  { %v1725_v50 = vmul.f32 %v2208_v47, %v1723_v39  ;;  %vm1730_vm9 = vweird.f32 %v2208_v47  ;;  %1872 = vmatpush.msra.mxu3 %v1828_v24  ;;  %1893 = vmatpush.msrb.mxu0 %v1827_v30  ;;  %v1931_v39 = vld [vmem:[%s3629_s25 + $0xe8] sm:$0xff] }
 0x703   :  { %1747 = vrot.lane.b32.xlu0 %v1745_v36, %s2606_s19  ;;  %vm1731_vm11 = vmor %vm1729_vm10, %vm1730_vm9  ;;  %v1932_v36 = vld [vmem:[%s3629_s25 + $0xf0] sm:$0xff]  ;;  %1943 = vmatpush.msrb.mxu2 %v1912_v48 }
 0x704   :  { %v1726_v51 = vsub.f32 1.0, %v1725_v50  ;;  %1873 = vmatpush.msra.mxu3 %v1826_v28  ;;  %1894 = vmatpush.msrb.mxu0 %v1825_v32  ;;  %v1927_v50 = vld [vmem:[%s3629_s25 + $0xc8] sm:$0xff] }
 0x705   :  { %1944 = vmatpush.msrb.mxu2 %v1911_v25 }
 0x706   :  { %v1727_v52 = vmul.f32 %v2208_v47, %v1726_v51  ;;  %1874 = vmatpush.msra.mxu3 %v1824_v31  ;;  %1895 = vmatpush.msrb.mxu0 %v1823_v34  ;;  %v1925_v51 = vld [vmem:[%s3629_s25 + $0xb8] sm:$0xff] }
 0x707   :  { %1945 = vmatpush.msrb.mxu2 %v1910_v40 }
 0x708   :  { %v1728_v29 = vadd.f32 %v2208_v47, %v1727_v52  ;;  %1875 = vmatpush.msra.mxu3 %v1822_v33  ;;  %v1909_v52 = vld [vmem:[%s3629_s25 + $0x38] sm:$0xff] }
 0x709   :  { %1946 = vmatpush.msrb.mxu2 %v1909_v52 }
 0x70a   :  { %v1732_v46 = vsel %vm1731_vm11, %v2208_v47, %v1728_v29  ;;  %1958 = vmatpush.msrb.mxu3 %v1933_v35  ;;  %v1928_v47 = vld [vmem:[%s3629_s25 + $0xd0] sm:$0xff]  ;;  %v1922_v29 = vld [vmem:[%s3629_s25 + $0xa0] sm:$0xff] }
 0x70b   :  { %v1737_v60 = vsel %vm1734_vm12, %v1736_v58, %v1732_v46  ;;  %v2197_v46 = vld [vmem:[#allocation21] ss:$0 sm:$0xff] }
 0x70c   :  { %1959 = vmatpush.msrb.mxu3 %v1932_v36 }
 0x70e   :  { %1960 = vmatpush.msrb.mxu3 %v1931_v39 }
 0x710   :  { %1961 = vmatpush.msrb.mxu3 %v1930_v42 }
 0x712   :  { %1962 = vmatpush.msrb.mxu3 %v1929_v23 }
 0x714   :  { %1963 = vmatpush.msrb.mxu3 %v1928_v47 }
 0x716   :  { %1964 = vmatpush.msrb.mxu3 %v1927_v50 }
 0x718   :  { %1965 = vmatpush.msrb.mxu3 %v1926_v27 }
 0x71a   :  { %1966 = vmatpush.msrb.mxu3 %v1925_v51 }
 0x775   :  { %v1748_v54 = vpop.permute.xlu0 %1747 }
 0x776   :  { %v1750_v55 = vadd.f32 %v1748_v54, %v1744_v53  ;;  %v1924_v53 = vld [vmem:[%s3629_s25 + $0xb0] sm:$0xff] }
 0x777   :  { %v1908_v54 = vld [vmem:[%s3629_s25 + $0x30] sm:$0xff]  ;;  %1967 = vmatpush.msrb.mxu3 %v1924_v53 }
 0x778   :  { %2209 = vtanh.f32 %v1750_v55  ;;  %v1923_v55 = vld [vmem:[%s3629_s25 + $0xa8] sm:$0xff]  ;;  %1947 = vmatpush.msrb.mxu2 %v1908_v54 }
 0x779   :  { %1968 = vmatpush.msrb.mxu3 %v1923_v55 }
 0x77a   :  { %1948 = vmatpush.msrb.mxu2 %v1907_v61 }
 0x77b   :  { %1969 = vmatpush.msrb.mxu3 %v1922_v29 }
 0x77c   :  { %1949 = vmatpush.msrb.mxu2 %v1906_v63 }
 0x77d   :  { %1970 = vmatpush.msrb.mxu3 %v1921_v43 }
 0x77e   :  { %v2210_v59 = vpop.eup %2209  ;;  %1950 = vmatpush.msrb.mxu2 %v1905_v1 }
 0x77f   :  { %v1752_v57 = vmul.f32 %v2210_v59, %v1737_v60  ;;  %1971 = vmatpush.msrb.mxu3 %v1920_v62 }
 0x780   :  { %1951 = vmatpush.msrb.mxu2 %v1904_v2 }
 0x781   :  { %1792 = vrot.lane.b32.xlu1 %v1752_v57, %s2606_s19  ;;  %1972 = vmatpush.msrb.mxu3 %v1919_v0 }
 0x782   :  { %1952 = vmatpush.msrb.mxu2 %v1903_v3 }
 0x783   :  { %1973 = vmatpush.msrb.mxu3 %v1918_v49 }
 0x784   :  { %1953 = vmatpush.msrb.mxu2 %v1902_v4 }
 0x7f3   :  { %v1793_v22 = vpop.permute.xlu1 %1792 }
 0x7f4   :  { %2153 = vmatmul.msk.f32.vlgmr.msra.gmra.mxu2 %vm1605_vm4, %v1793_v22 }
 0x877   :  { %v1813_v58 = vpop.f32.mrf.mxu2 }
 0x878   :  { %v1814_v59 = vadd.f32 %v1813_v58, %v1788_v56 }
 0x87a   :  { %v1820_v60 = vadd.f32 %v2197_v46, %v1814_v59 }
 0x87c   :  { %v1821_v57 = vmax.f32 %v1820_v60, 0.0 }
 0x87e   :  { %1876 = vmatmul.f32.vlgmr.msra.gmra.mxu3 %v1821_v57  ;;  %1896 = vmatmul.f32.vlgmr.msrb.gmra.mxu0 %v1821_v57 }
 0x8fb   :  { %v1897_v7 = vpop.f32.mrf.mxu0 }
 0x8fc   :  { %v1898_v8 = vadd.f32 %v1897_v7, %v1857_v6 }
 0x8fe   :  { %v1901_v9 = vmax.f32 %v1898_v8, 0.0 }
 0x900   :  { %1974 = vmatmul.f32.vlgmr.msrb.gmra.mxu3 %v1901_v9 }
 0x901   :  { %v1877_v11 = vpop.f32.mrf.mxu3 }
 0x902   :  { %v1878_v12 = vadd.f32 %v1877_v11, %v1856_v10 }
 0x904   :  { %v1900_v13 = vmax.f32 %v1878_v12, 0.0 }
 0x906   :  { %1954 = vmatmul.f32.vlgmr.msrb.gmra.mxu2 %v1900_v13 }
 0x983   :  { %v1975_v17 = vpop.f32.mrf.mxu3 }
 0x989   :  { %v1955_v15 = vpop.f32.mrf.mxu2 }
 0x98a   :  { %v1956_v16 = vadd.f32 %v2198_v14, %v1955_v15 }
 0x98c   :  { %v1976_v18 = vadd.f32 %v1975_v17, %v1956_v16 }
 0x98e   :  { %1979 = vst.msk [vmem:[%s3631_s27] sm:$0x3] %vm1978_vm15, %v1976_v18 }
 0x98f   :  { %1984 = vsyncpa [#allocation3], 1 }
 0x990   :  { %1985 = vsyncpa [#allocation5], 1 }
 0x991   :  { %1986 = vsyncpa [#allocation8], 1 }
 0x992   :  { %1987 = vsyncpa [#allocation11], 1 }
 0x993   :  { %1988 = vsyncpa [#allocation14], 1 }
 0x994   :  { %1989 = vsyncpa [#allocation17], 1 }
 0x995   :  { %1990 = vsyncpa [#allocation20], 1 }
 0x996   :  { %1991 = vsyncpa [#allocation23], 1 }

</bundles_post_ra>
